<compile_context>
chip_gen: v7x
topology: tpu7x:2x2x1
jax: 0.10.0
libtpu: 0.0.40
codegen_flags: <defaults>
</compile_context>

<pallas_src>
import jax
import jax.numpy as jnp
import numpy as np
from jax import lax
from jax.experimental import pallas as pl
from jax.experimental.pallas import tpu as pltpu


def bilstm_fc_kernel(x_ref, wih_ref, b8_ref, whh_ref, wfc_ref, bfc_ref,
                     out_ref, gx_ref):
    """One batch-block of the fused bidirectional-LSTM + FC forward.

    x_ref:   (T, TB, E)   time-major embedded inputs (matmul dtype)
    wih_ref: (E, 8H)      input->hidden weights, columns grouped [i_f i_b f_f f_b g_f g_b o_f o_b]
    b8_ref:  (1, 8H)      summed ih+hh biases (both directions), grouped layout, f32
    whh_ref: (2H, 8H)     block-diagonal recurrent weights, grouped columns
    wfc_ref: (2H, CP), bfc_ref: (1, CP)   FC weight/bias padded to lane-dense CP (mult of 128)
    out_ref: (TB, CP)
    gx_ref:  (T, TB, 8H)  f32 VMEM scratch for the hoisted input projection (+ biases).
    """
    T, TB, E = x_ref.shape
    H2, H8 = whh_ref.shape          # 2H, 8H
    H = H2 // 2
    cdt = whh_ref.dtype             # matmul operand dtype (f32 or bf16)

    # ---- hoisted input->hidden projection for BOTH directions (one matmul, bias folded once) ----
    x2d = x_ref[...].reshape(T * TB, E)
    gx = jnp.dot(x2d, wih_ref[...], preferred_element_type=jnp.float32)
    gx = gx + b8_ref[...].astype(jnp.float32)
    gx_ref[...] = gx.reshape(T, TB, H8)

    whh = whh_ref[...]

    # Static lane masks (hoisted out of the loop).
    lanes = lax.broadcasted_iota(jnp.int32, (TB, H8), 1)
    is_fwd = (lanes % H2) < H                       # fwd-direction lanes within each gate group
    is_g = (lanes >= 4 * H) & (lanes < 6 * H)       # "g" gate lanes -> tanh, others -> sigmoid

    def step(t, carry):
        h2, c2 = carry                                            # (TB, 2H) f32
        # fwd direction reads time t, bwd direction reads time T-1-t (disjoint lane groups).
        gx_t = jnp.where(is_fwd, gx_ref[t], gx_ref[T - 1 - t])    # (TB, 8H)
        gates = gx_t + jnp.dot(h2.astype(cdt), whh,
                               preferred_element_type=jnp.float32)
        # Single tanh pass over the full gate tile; sigmoid(x) = 0.5*(tanh(x/2)+1).
        pre = jnp.where(is_g, gates, 0.5 * gates)
        th = jnp.tanh(pre)
        act = jnp.where(is_g, th, 0.5 * th + 0.5)
        i2 = act[:, 0 * H2:1 * H2]
        f2 = act[:, 1 * H2:2 * H2]
        g2 = act[:, 2 * H2:3 * H2]
        o2 = act[:, 3 * H2:4 * H2]
        c2 = f2 * c2 + i2 * g2
        h2 = o2 * jnp.tanh(c2)
        return h2, c2

    zeros = jnp.zeros((TB, H2), jnp.float32)
    h2, _ = lax.fori_loop(0, T, step, (zeros, zeros), unroll=True)

    # torch.cat((hidden[-2], hidden[-1]), dim=1) @ W_fc^T + b_fc : h2 is already [h_fwd | h_bwd],
    # so the FC is a single dot with no concat / weight slicing.
    out = (jnp.dot(h2.astype(cdt), wfc_ref[...], preferred_element_type=jnp.float32)
           + bfc_ref[...].astype(jnp.float32))
    out_ref[...] = out.astype(out_ref.dtype)


def _group_gate_columns(w_t, direction, H):
    """w_t: (rows, 4H) with PyTorch gate-order columns [i|f|g|o].
    Returns (rows, 8H) grouped as [i_f i_b f_f f_b g_f g_b o_f o_b], placing this
    direction's blocks and zeros in the other direction's columns (block-diagonal whh)."""
    blocks = []
    for k in range(4):
        blk = w_t[:, k * H:(k + 1) * H]
        zero = jnp.zeros_like(blk)
        blocks.extend([blk, zero] if direction == 0 else [zero, blk])
    return jnp.concatenate(blocks, axis=1)


def _interleave_dirs(w_f_t, w_b_t, H):
    """(rows, 4H) fwd and (rows, 4H) bwd -> (rows, 8H) grouped [i_f i_b f_f f_b g_f g_b o_f o_b]."""
    blocks = []
    for k in range(4):
        blocks.append(w_f_t[:, k * H:(k + 1) * H])
        blocks.append(w_b_t[:, k * H:(k + 1) * H])
    return jnp.concatenate(blocks, axis=1)


def init_params(key, vocab_size, embedding_dim, hidden_size, num_classes):
    ks = jax.random.split(key, 12)
    H, E, C = hidden_size, embedding_dim, num_classes
    bound = 1.0 / np.sqrt(H)

    def u(k, shape):
        return jax.random.uniform(k, shape, jnp.float32, -bound, bound)

    emb = jax.random.normal(ks[0], (vocab_size, E), jnp.float32)
    emb = emb.at[0].set(0.0)  # padding_idx=0 -> zero row (as nn.Embedding does)

    return {
        "embedding": emb,
        # forward direction
        "w_ih_f": u(ks[1], (4 * H, E)),
        "w_hh_f": u(ks[2], (4 * H, H)),
        "b_ih_f": u(ks[3], (4 * H,)),
        "b_hh_f": u(ks[4], (4 * H,)),
        # backward direction
        "w_ih_b": u(ks[5], (4 * H, E)),
        "w_hh_b": u(ks[6], (4 * H, H)),
        "b_ih_b": u(ks[7], (4 * H,)),
        "b_hh_b": u(ks[8], (4 * H,)),
        # fc
        "fc_w": jax.random.uniform(ks[9], (C, 2 * H), jnp.float32,
                                   -1.0 / np.sqrt(2 * H), 1.0 / np.sqrt(2 * H)),
        "fc_b": jax.random.uniform(ks[10], (C,), jnp.float32,
                                   -1.0 / np.sqrt(2 * H), 1.0 / np.sqrt(2 * H)),
    }


def comments_classifier_forward(params, input_ids, *, matmul_dtype=jnp.float32,
                                batch_block=8):
    B, T = input_ids.shape
    H = params["w_hh_f"].shape[1]
    E = params["embedding"].shape[1]
    C = params["fc_b"].shape[0]

    # Embedding lookup, gathered directly time-major (no HBM-side transpose op).
    x = jnp.take(params["embedding"], input_ids.T, axis=0).astype(matmul_dtype)  # (T, B, E)

    # Pad batch (sublane dim) up to a multiple of the batch block (>= 8 sublanes).
    TB = max(8, batch_block)
    BP = ((B + TB - 1) // TB) * TB
    if BP != B:
        x = jnp.pad(x, ((0, 0), (0, BP - B), (0, 0)))

    # Fused, gate-grouped weights (see kernel docstring for layout).
    wih = _interleave_dirs(params["w_ih_f"].T, params["w_ih_b"].T, H).astype(matmul_dtype)  # (E, 8H)
    whh_blk = jnp.concatenate(
        [_group_gate_columns(params["w_hh_f"].T, 0, H),
         _group_gate_columns(params["w_hh_b"].T, 1, H)],
        axis=0).astype(matmul_dtype)                                                        # (2H, 8H)
    b_f4 = (params["b_ih_f"] + params["b_hh_f"])[None, :]                                   # (1, 4H)
    b_b4 = (params["b_ih_b"] + params["b_hh_b"])[None, :]
    b8 = _interleave_dirs(b_f4, b_b4, H).astype(jnp.float32)                                # (1, 8H)

    # FC weight/bias padded to a lane-dense (multiple of 128) output width.
    CP = ((C + 127) // 128) * 128
    wfc = jnp.pad(params["fc_w"].T.astype(matmul_dtype), ((0, 0), (0, CP - C)))             # (2H, CP)
    bfc = jnp.pad(params["fc_b"][None, :].astype(jnp.float32), ((0, 0), (0, CP - C)))       # (1, CP)

    # TODO(synk): at production (T, B, E) sizes, stream the hoisted projection over T chunks
    # (or emit_pipeline on x) instead of whole-sequence-in-VMEM; v7x has only 64 MiB VMEM.
    grid = (BP // TB,)
    out_padded = pl.pallas_call(
        bilstm_fc_kernel,
        out_shape=jax.ShapeDtypeStruct((BP, CP), jnp.float32),
        grid_spec=pltpu.PrefetchScalarGridSpec(
            num_scalar_prefetch=0,
            grid=grid,
            in_specs=[
                pl.BlockSpec((T, TB, E), lambda b: (0, b, 0)),      # x (time-major, batch-tiled)
                pl.BlockSpec((E, 8 * H), lambda b: (0, 0)),         # wih (both dirs, grouped)
                pl.BlockSpec((1, 8 * H), lambda b: (0, 0)),         # fused bias
                pl.BlockSpec((2 * H, 8 * H), lambda b: (0, 0)),     # whh block-diagonal
                pl.BlockSpec((2 * H, CP), lambda b: (0, 0)),        # fc weight (lane padded)
                pl.BlockSpec((1, CP), lambda b: (0, 0)),            # fc bias   (lane padded)
            ],
            out_specs=pl.BlockSpec((TB, CP), lambda b: (b, 0)),
            scratch_shapes=[pltpu.VMEM((T, TB, 8 * H), jnp.float32)],
        ),
        compiler_params=pltpu.CompilerParams(
            dimension_semantics=("parallel",),
            vmem_limit_bytes=32 * 1024 * 1024),
    )(x, wih, b8, whh_blk, wfc, bfc)
    return out_padded[:B, :C]


def reference_forward(params, input_ids):
    """Pure-JAX reference mirroring PyTorch semantics (for verification)."""
    emb = jnp.take(params["embedding"], input_ids, axis=0)  # (B, T, E)
    B, T, E = emb.shape
    H = params["w_hh_f"].shape[1]

    def run_dir(xs, w_ih, w_hh, b_ih, b_hh):
        def cell(carry, x_t):
            h, c = carry
            gates = x_t @ w_ih.T + b_ih + h @ w_hh.T + b_hh
            i, f, g, o = jnp.split(gates, 4, axis=1)
            i, f, o = jax.nn.sigmoid(i), jax.nn.sigmoid(f), jax.nn.sigmoid(o)
            g = jnp.tanh(g)
            c = f * c + i * g
            h = o * jnp.tanh(c)
            return (h, c), h
        (h, _), _ = lax.scan(cell, (jnp.zeros((B, H)), jnp.zeros((B, H))),
                             jnp.transpose(xs, (1, 0, 2)))
        return h

    h_fwd = run_dir(emb, params["w_ih_f"], params["w_hh_f"],
                    params["b_ih_f"], params["b_hh_f"])
    h_bwd = run_dir(emb[:, ::-1, :], params["w_ih_b"], params["w_hh_b"],
                    params["b_ih_b"], params["b_hh_b"])
    h_cat = jnp.concatenate([h_fwd, h_bwd], axis=1)
    return h_cat @ params["fc_w"].T + params["fc_b"]


if __name__ == "__main__":
    vocab_size, embedding_dim, hidden_size, num_classes = 50, 16, 32, 4
    B, T = 2, 8

    key = jax.random.PRNGKey(0)
    k_param, k_ids = jax.random.split(key)
    params = init_params(k_param, vocab_size, embedding_dim, hidden_size, num_classes)

    input_ids = jax.random.randint(k_ids, (B, T), 0, vocab_size, dtype=jnp.int32)
    input_ids = input_ids.at[:, -2:].set(0)  # a bit of padding (id 0)

    ref = jax.block_until_ready(reference_forward(params, input_ids))

    # f32 matmul operands: tight check against the pure-JAX reference.
    out = jax.block_until_ready(comments_classifier_forward(params, input_ids))
    np.testing.assert_allclose(np.asarray(out), np.asarray(ref), rtol=2e-3, atol=2e-3)

    # bf16 matmul operands (f32 accumulation/state) for the MXU-native path: looser check.
    out_bf16 = jax.block_until_ready(
        comments_classifier_forward(params, input_ids, matmul_dtype=jnp.bfloat16))
    np.testing.assert_allclose(np.asarray(out_bf16), np.asarray(ref), rtol=1e-1, atol=1e-1)

    print("KERNEL_OK")
</pallas_src>

<mosaic_0001>
module attributes {stable_mosaic.version = 11 : i64} {
  func.func @bilstm_fc_kernel(%arg0: i32, %arg1: memref<8x8x16xf32, #tpu.memory_space<vmem>>, %arg2: memref<16x256xf32, #tpu.memory_space<vmem>>, %arg3: memref<1x256xf32, #tpu.memory_space<vmem>>, %arg4: memref<64x256xf32, #tpu.memory_space<vmem>>, %arg5: memref<64x128xf32, #tpu.memory_space<vmem>>, %arg6: memref<1x128xf32, #tpu.memory_space<vmem>>, %arg7: memref<8x128xf32, #tpu.memory_space<vmem>>, %arg8: memref<8x8x256xf32, #tpu.memory_space<vmem>>) attributes {dimension_semantics = [#tpu.dimension_semantics<parallel>], iteration_bounds = array<i64: 1>, scalar_prefetch = 0 : i64, scratch_operands = 1 : i64, tpu.core_type = #tpu.core_type<tc>, window_params = [{transform_indices = @transform_0, window_bounds = array<i64: 8, 8, 16>}, {pipeline_mode = #tpu.pipeline_mode<synchronous>, transform_indices = @transform_1, window_bounds = array<i64: 16, 256>}, {pipeline_mode = #tpu.pipeline_mode<synchronous>, transform_indices = @transform_2, window_bounds = array<i64: 1, 256>}, {pipeline_mode = #tpu.pipeline_mode<synchronous>, transform_indices = @transform_3, window_bounds = array<i64: 64, 256>}, {pipeline_mode = #tpu.pipeline_mode<synchronous>, transform_indices = @transform_4, window_bounds = array<i64: 64, 128>}, {pipeline_mode = #tpu.pipeline_mode<synchronous>, transform_indices = @transform_5, window_bounds = array<i64: 1, 128>}, {transform_indices = @transform_6, window_bounds = array<i64: 8, 128>}]} {
    %c0 = arith.constant 0 : index
    %c0_0 = arith.constant 0 : index
    %c0_1 = arith.constant 0 : index
    %0 = vector.load %arg1[%c0, %c0_0, %c0_1] : memref<8x8x16xf32, #tpu.memory_space<vmem>>, vector<8x8x16xf32>
    %1 = vector.shape_cast %0 : vector<8x8x16xf32> to vector<64x16xf32>
    %c0_2 = arith.constant 0 : index
    %c0_3 = arith.constant 0 : index
    %2 = vector.load %arg2[%c0_2, %c0_3] : memref<16x256xf32, #tpu.memory_space<vmem>>, vector<16x256xf32>
    %cst = arith.constant dense<0.000000e+00> : vector<64x256xf32>
    %3 = tpu.matmul %1, %2, %cst {dimension_numbers = #tpu.dot_dimension_numbers<[1], [0], [0], [1], [0, 0, 1, 1], [], []>} : vector<64x16xf32>, vector<16x256xf32>, vector<64x256xf32> -> vector<64x256xf32>
    %c0_4 = arith.constant 0 : index
    %c0_5 = arith.constant 0 : index
    %4 = vector.load %arg3[%c0_4, %c0_5] : memref<1x256xf32, #tpu.memory_space<vmem>>, vector<1x256xf32>
    %5 = vector.broadcast %4 : vector<1x256xf32> to vector<64x256xf32>
    %6 = arith.addf %3, %5 : vector<64x256xf32>
    %7 = vector.shape_cast %6 : vector<64x256xf32> to vector<8x8x256xf32>
    %c0_6 = arith.constant 0 : index
    %c0_7 = arith.constant 0 : index
    %c0_8 = arith.constant 0 : index
    %8 = vector.load %arg8[%c0_6, %c0_7, %c0_8] : memref<8x8x256xf32, #tpu.memory_space<vmem>>, vector<8x8x256xf32>
    tpu.vector_store %arg8[%c0_6, %c0_7, %c0_8], %7 {strides = array<i32>} : memref<8x8x256xf32, #tpu.memory_space<vmem>>, vector<8x8x256xf32>,
    %c0_9 = arith.constant 0 : index
    %c0_10 = arith.constant 0 : index
    %9 = vector.load %arg4[%c0_9, %c0_10] : memref<64x256xf32, #tpu.memory_space<vmem>>, vector<64x256xf32>
    %10 = tpu.iota {dimensions = array<i32: 1>} : vector<8x256xi32>
    %c64_i32 = arith.constant 64 : i32
    %c0_i32 = arith.constant 0 : i32
    %11 = arith.cmpi eq, %c64_i32, %c0_i32 : i32
    %c1_i32 = arith.constant 1 : i32
    %12 = arith.select %11, %c1_i32, %c64_i32 : i32
    %13 = vector.broadcast %12 : i32 to vector<8x256xi32>
    %14 = arith.remsi %10, %13 : vector<8x256xi32>
    %c0_i32_11 = arith.constant 0 : i32
    %15 = vector.broadcast %c0_i32_11 : i32 to vector<8x256xi32>
    %16 = arith.cmpi ne, %14, %15 : vector<8x256xi32>
    %c0_i32_12 = arith.constant 0 : i32
    %17 = vector.broadcast %c0_i32_12 : i32 to vector<8x256xi32>
    %18 = arith.cmpi slt, %14, %17 : vector<8x256xi32>
    %c0_i32_13 = arith.constant 0 : i32
    %19 = arith.cmpi slt, %12, %c0_i32_13 : i32
    %20 = vector.broadcast %19 : i1 to vector<8x256xi1>
    %21 = vector.broadcast %20 : vector<8x256xi1> to vector<8x256xi1>
    %22 = arith.xori %18, %21 : vector<8x256xi1>
    %23 = arith.andi %22, %16 : vector<8x256xi1>
    %24 = vector.broadcast %12 : i32 to vector<8x256xi32>
    %25 = arith.addi %14, %24 : vector<8x256xi32>
    %26 = arith.select %23, %25, %14 : vector<8x256xi1>, vector<8x256xi32>
    %c32_i32 = arith.constant 32 : i32
    %27 = vector.broadcast %c32_i32 : i32 to vector<8x256xi32>
    %28 = arith.cmpi slt, %26, %27 : vector<8x256xi32>
    %c128_i32 = arith.constant 128 : i32
    %29 = vector.broadcast %c128_i32 : i32 to vector<8x256xi32>
    %30 = arith.cmpi sge, %10, %29 : vector<8x256xi32>
    %c192_i32 = arith.constant 192 : i32
    %31 = vector.broadcast %c192_i32 : i32 to vector<8x256xi32>
    %32 = arith.cmpi slt, %10, %31 : vector<8x256xi32>
    %33 = arith.andi %30, %32 : vector<8x256xi1>
    %cst_14 = arith.constant 0.000000e+00 : f32
    %34 = vector.broadcast %cst_14 : f32 to vector<8x64xf32>
    %c0_i32_15 = arith.constant 0 : i32
    %35 = arith.index_cast %c0_i32_15 : i32 to index
    %c0_16 = arith.constant 0 : index
    %c0_17 = arith.constant 0 : index
    %36 = vector.load %arg8[%35, %c0_16, %c0_17] : memref<8x8x256xf32, #tpu.memory_space<vmem>>, vector<1x8x256xf32>
    %37 = vector.shape_cast %36 : vector<1x8x256xf32> to vector<8x256xf32>
    %c7_i32 = arith.constant 7 : i32
    %38 = arith.subi %c7_i32, %c0_i32_15 : i32
    %39 = arith.index_cast %38 : i32 to index
    %c0_18 = arith.constant 0 : index
    %c0_19 = arith.constant 0 : index
    %40 = vector.load %arg8[%39, %c0_18, %c0_19] : memref<8x8x256xf32, #tpu.memory_space<vmem>>, vector<1x8x256xf32>
    %41 = vector.shape_cast %40 : vector<1x8x256xf32> to vector<8x256xf32>
    %42 = arith.select %28, %37, %41 : vector<8x256xi1>, vector<8x256xf32>
    %cst_20 = arith.constant dense<0.000000e+00> : vector<8x256xf32>
    %43 = tpu.matmul %34, %9, %cst_20 {dimension_numbers = #tpu.dot_dimension_numbers<[1], [0], [0], [1], [0, 0, 1, 1], [], []>} : vector<8x64xf32>, vector<64x256xf32>, vector<8x256xf32> -> vector<8x256xf32>
    %44 = arith.addf %42, %43 : vector<8x256xf32>
    %cst_21 = arith.constant 5.000000e-01 : f32
    %45 = vector.broadcast %cst_21 : f32 to vector<8x256xf32>
    %46 = arith.mulf %45, %44 : vector<8x256xf32>
    %47 = arith.select %33, %44, %46 : vector<8x256xi1>, vector<8x256xf32>
    %48 = math.tanh %47 : vector<8x256xf32>
    %cst_22 = arith.constant 5.000000e-01 : f32
    %49 = vector.broadcast %cst_22 : f32 to vector<8x256xf32>
    %50 = arith.mulf %49, %48 : vector<8x256xf32>
    %cst_23 = arith.constant 5.000000e-01 : f32
    %51 = vector.broadcast %cst_23 : f32 to vector<8x256xf32>
    %52 = arith.addf %50, %51 : vector<8x256xf32>
    %53 = arith.select %33, %48, %52 : vector<8x256xi1>, vector<8x256xf32>
    %54 = vector.extract_strided_slice %53 {offsets = [0, 0], sizes = [8, 64], strides = [1, 1]} : vector<8x256xf32> to vector<8x64xf32>
    %55 = vector.extract_strided_slice %53 {offsets = [0, 64], sizes = [8, 64], strides = [1, 1]} : vector<8x256xf32> to vector<8x64xf32>
    %56 = vector.extract_strided_slice %53 {offsets = [0, 128], sizes = [8, 64], strides = [1, 1]} : vector<8x256xf32> to vector<8x64xf32>
    %57 = vector.extract_strided_slice %53 {offsets = [0, 192], sizes = [8, 64], strides = [1, 1]} : vector<8x256xf32> to vector<8x64xf32>
    %58 = arith.mulf %55, %34 : vector<8x64xf32>
    %59 = arith.mulf %54, %56 : vector<8x64xf32>
    %60 = arith.addf %58, %59 : vector<8x64xf32>
    %61 = math.tanh %60 : vector<8x64xf32>
    %62 = arith.mulf %57, %61 : vector<8x64xf32>
    %c1_i32_24 = arith.constant 1 : i32
    %63 = arith.index_cast %c1_i32_24 : i32 to index
    %c0_25 = arith.constant 0 : index
    %c0_26 = arith.constant 0 : index
    %64 = vector.load %arg8[%63, %c0_25, %c0_26] : memref<8x8x256xf32, #tpu.memory_space<vmem>>, vector<1x8x256xf32>
    %65 = vector.shape_cast %64 : vector<1x8x256xf32> to vector<8x256xf32>
    %c7_i32_27 = arith.constant 7 : i32
    %66 = arith.subi %c7_i32_27, %c1_i32_24 : i32
    %67 = arith.index_cast %66 : i32 to index
    %c0_28 = arith.constant 0 : index
    %c0_29 = arith.constant 0 : index
    %68 = vector.load %arg8[%67, %c0_28, %c0_29] : memref<8x8x256xf32, #tpu.memory_space<vmem>>, vector<1x8x256xf32>
    %69 = vector.shape_cast %68 : vector<1x8x256xf32> to vector<8x256xf32>
    %70 = arith.select %28, %65, %69 : vector<8x256xi1>, vector<8x256xf32>
    %cst_30 = arith.constant dense<0.000000e+00> : vector<8x256xf32>
    %71 = tpu.matmul %62, %9, %cst_30 {dimension_numbers = #tpu.dot_dimension_numbers<[1], [0], [0], [1], [0, 0, 1, 1], [], []>} : vector<8x64xf32>, vector<64x256xf32>, vector<8x256xf32> -> vector<8x256xf32>
    %72 = arith.addf %70, %71 : vector<8x256xf32>
    %cst_31 = arith.constant 5.000000e-01 : f32
    %73 = vector.broadcast %cst_31 : f32 to vector<8x256xf32>
    %74 = arith.mulf %73, %72 : vector<8x256xf32>
    %75 = arith.select %33, %72, %74 : vector<8x256xi1>, vector<8x256xf32>
    %76 = math.tanh %75 : vector<8x256xf32>
    %cst_32 = arith.constant 5.000000e-01 : f32
    %77 = vector.broadcast %cst_32 : f32 to vector<8x256xf32>
    %78 = arith.mulf %77, %76 : vector<8x256xf32>
    %cst_33 = arith.constant 5.000000e-01 : f32
    %79 = vector.broadcast %cst_33 : f32 to vector<8x256xf32>
    %80 = arith.addf %78, %79 : vector<8x256xf32>
    %81 = arith.select %33, %76, %80 : vector<8x256xi1>, vector<8x256xf32>
    %82 = vector.extract_strided_slice %81 {offsets = [0, 0], sizes = [8, 64], strides = [1, 1]} : vector<8x256xf32> to vector<8x64xf32>
    %83 = vector.extract_strided_slice %81 {offsets = [0, 64], sizes = [8, 64], strides = [1, 1]} : vector<8x256xf32> to vector<8x64xf32>
    %84 = vector.extract_strided_slice %81 {offsets = [0, 128], sizes = [8, 64], strides = [1, 1]} : vector<8x256xf32> to vector<8x64xf32>
    %85 = vector.extract_strided_slice %81 {offsets = [0, 192], sizes = [8, 64], strides = [1, 1]} : vector<8x256xf32> to vector<8x64xf32>
    %86 = arith.mulf %83, %60 : vector<8x64xf32>
    %87 = arith.mulf %82, %84 : vector<8x64xf32>
    %88 = arith.addf %86, %87 : vector<8x64xf32>
    %89 = math.tanh %88 : vector<8x64xf32>
    %90 = arith.mulf %85, %89 : vector<8x64xf32>
    %c2_i32 = arith.constant 2 : i32
    %91 = arith.index_cast %c2_i32 : i32 to index
    %c0_34 = arith.constant 0 : index
    %c0_35 = arith.constant 0 : index
    %92 = vector.load %arg8[%91, %c0_34, %c0_35] : memref<8x8x256xf32, #tpu.memory_space<vmem>>, vector<1x8x256xf32>
    %93 = vector.shape_cast %92 : vector<1x8x256xf32> to vector<8x256xf32>
    %c7_i32_36 = arith.constant 7 : i32
    %94 = arith.subi %c7_i32_36, %c2_i32 : i32
    %95 = arith.index_cast %94 : i32 to index
    %c0_37 = arith.constant 0 : index
    %c0_38 = arith.constant 0 : index
    %96 = vector.load %arg8[%95, %c0_37, %c0_38] : memref<8x8x256xf32, #tpu.memory_space<vmem>>, vector<1x8x256xf32>
    %97 = vector.shape_cast %96 : vector<1x8x256xf32> to vector<8x256xf32>
    %98 = arith.select %28, %93, %97 : vector<8x256xi1>, vector<8x256xf32>
    %cst_39 = arith.constant dense<0.000000e+00> : vector<8x256xf32>
    %99 = tpu.matmul %90, %9, %cst_39 {dimension_numbers = #tpu.dot_dimension_numbers<[1], [0], [0], [1], [0, 0, 1, 1], [], []>} : vector<8x64xf32>, vector<64x256xf32>, vector<8x256xf32> -> vector<8x256xf32>
    %100 = arith.addf %98, %99 : vector<8x256xf32>
    %cst_40 = arith.constant 5.000000e-01 : f32
    %101 = vector.broadcast %cst_40 : f32 to vector<8x256xf32>
    %102 = arith.mulf %101, %100 : vector<8x256xf32>
    %103 = arith.select %33, %100, %102 : vector<8x256xi1>, vector<8x256xf32>
    %104 = math.tanh %103 : vector<8x256xf32>
    %cst_41 = arith.constant 5.000000e-01 : f32
    %105 = vector.broadcast %cst_41 : f32 to vector<8x256xf32>
    %106 = arith.mulf %105, %104 : vector<8x256xf32>
    %cst_42 = arith.constant 5.000000e-01 : f32
    %107 = vector.broadcast %cst_42 : f32 to vector<8x256xf32>
    %108 = arith.addf %106, %107 : vector<8x256xf32>
    %109 = arith.select %33, %104, %108 : vector<8x256xi1>, vector<8x256xf32>
    %110 = vector.extract_strided_slice %109 {offsets = [0, 0], sizes = [8, 64], strides = [1, 1]} : vector<8x256xf32> to vector<8x64xf32>
    %111 = vector.extract_strided_slice %109 {offsets = [0, 64], sizes = [8, 64], strides = [1, 1]} : vector<8x256xf32> to vector<8x64xf32>
    %112 = vector.extract_strided_slice %109 {offsets = [0, 128], sizes = [8, 64], strides = [1, 1]} : vector<8x256xf32> to vector<8x64xf32>
    %113 = vector.extract_strided_slice %109 {offsets = [0, 192], sizes = [8, 64], strides = [1, 1]} : vector<8x256xf32> to vector<8x64xf32>
    %114 = arith.mulf %111, %88 : vector<8x64xf32>
    %115 = arith.mulf %110, %112 : vector<8x64xf32>
    %116 = arith.addf %114, %115 : vector<8x64xf32>
    %117 = math.tanh %116 : vector<8x64xf32>
    %118 = arith.mulf %113, %117 : vector<8x64xf32>
    %c3_i32 = arith.constant 3 : i32
    %119 = arith.index_cast %c3_i32 : i32 to index
    %c0_43 = arith.constant 0 : index
    %c0_44 = arith.constant 0 : index
    %120 = vector.load %arg8[%119, %c0_43, %c0_44] : memref<8x8x256xf32, #tpu.memory_space<vmem>>, vector<1x8x256xf32>
    %121 = vector.shape_cast %120 : vector<1x8x256xf32> to vector<8x256xf32>
    %c7_i32_45 = arith.constant 7 : i32
    %122 = arith.subi %c7_i32_45, %c3_i32 : i32
    %123 = arith.index_cast %122 : i32 to index
    %c0_46 = arith.constant 0 : index
    %c0_47 = arith.constant 0 : index
    %124 = vector.load %arg8[%123, %c0_46, %c0_47] : memref<8x8x256xf32, #tpu.memory_space<vmem>>, vector<1x8x256xf32>
    %125 = vector.shape_cast %124 : vector<1x8x256xf32> to vector<8x256xf32>
    %126 = arith.select %28, %121, %125 : vector<8x256xi1>, vector<8x256xf32>
    %cst_48 = arith.constant dense<0.000000e+00> : vector<8x256xf32>
    %127 = tpu.matmul %118, %9, %cst_48 {dimension_numbers = #tpu.dot_dimension_numbers<[1], [0], [0], [1], [0, 0, 1, 1], [], []>} : vector<8x64xf32>, vector<64x256xf32>, vector<8x256xf32> -> vector<8x256xf32>
    %128 = arith.addf %126, %127 : vector<8x256xf32>
    %cst_49 = arith.constant 5.000000e-01 : f32
    %129 = vector.broadcast %cst_49 : f32 to vector<8x256xf32>
    %130 = arith.mulf %129, %128 : vector<8x256xf32>
    %131 = arith.select %33, %128, %130 : vector<8x256xi1>, vector<8x256xf32>
    %132 = math.tanh %131 : vector<8x256xf32>
    %cst_50 = arith.constant 5.000000e-01 : f32
    %133 = vector.broadcast %cst_50 : f32 to vector<8x256xf32>
    %134 = arith.mulf %133, %132 : vector<8x256xf32>
    %cst_51 = arith.constant 5.000000e-01 : f32
    %135 = vector.broadcast %cst_51 : f32 to vector<8x256xf32>
    %136 = arith.addf %134, %135 : vector<8x256xf32>
    %137 = arith.select %33, %132, %136 : vector<8x256xi1>, vector<8x256xf32>
    %138 = vector.extract_strided_slice %137 {offsets = [0, 0], sizes = [8, 64], strides = [1, 1]} : vector<8x256xf32> to vector<8x64xf32>
    %139 = vector.extract_strided_slice %137 {offsets = [0, 64], sizes = [8, 64], strides = [1, 1]} : vector<8x256xf32> to vector<8x64xf32>
    %140 = vector.extract_strided_slice %137 {offsets = [0, 128], sizes = [8, 64], strides = [1, 1]} : vector<8x256xf32> to vector<8x64xf32>
    %141 = vector.extract_strided_slice %137 {offsets = [0, 192], sizes = [8, 64], strides = [1, 1]} : vector<8x256xf32> to vector<8x64xf32>
    %142 = arith.mulf %139, %116 : vector<8x64xf32>
    %143 = arith.mulf %138, %140 : vector<8x64xf32>
    %144 = arith.addf %142, %143 : vector<8x64xf32>
    %145 = math.tanh %144 : vector<8x64xf32>
    %146 = arith.mulf %141, %145 : vector<8x64xf32>
    %c4_i32 = arith.constant 4 : i32
    %147 = arith.index_cast %c4_i32 : i32 to index
    %c0_52 = arith.constant 0 : index
    %c0_53 = arith.constant 0 : index
    %148 = vector.load %arg8[%147, %c0_52, %c0_53] : memref<8x8x256xf32, #tpu.memory_space<vmem>>, vector<1x8x256xf32>
    %149 = vector.shape_cast %148 : vector<1x8x256xf32> to vector<8x256xf32>
    %c7_i32_54 = arith.constant 7 : i32
    %150 = arith.subi %c7_i32_54, %c4_i32 : i32
    %151 = arith.index_cast %150 : i32 to index
    %c0_55 = arith.constant 0 : index
    %c0_56 = arith.constant 0 : index
    %152 = vector.load %arg8[%151, %c0_55, %c0_56] : memref<8x8x256xf32, #tpu.memory_space<vmem>>, vector<1x8x256xf32>
    %153 = vector.shape_cast %152 : vector<1x8x256xf32> to vector<8x256xf32>
    %154 = arith.select %28, %149, %153 : vector<8x256xi1>, vector<8x256xf32>
    %cst_57 = arith.constant dense<0.000000e+00> : vector<8x256xf32>
    %155 = tpu.matmul %146, %9, %cst_57 {dimension_numbers = #tpu.dot_dimension_numbers<[1], [0], [0], [1], [0, 0, 1, 1], [], []>} : vector<8x64xf32>, vector<64x256xf32>, vector<8x256xf32> -> vector<8x256xf32>
    %156 = arith.addf %154, %155 : vector<8x256xf32>
    %cst_58 = arith.constant 5.000000e-01 : f32
    %157 = vector.broadcast %cst_58 : f32 to vector<8x256xf32>
    %158 = arith.mulf %157, %156 : vector<8x256xf32>
    %159 = arith.select %33, %156, %158 : vector<8x256xi1>, vector<8x256xf32>
    %160 = math.tanh %159 : vector<8x256xf32>
    %cst_59 = arith.constant 5.000000e-01 : f32
    %161 = vector.broadcast %cst_59 : f32 to vector<8x256xf32>
    %162 = arith.mulf %161, %160 : vector<8x256xf32>
    %cst_60 = arith.constant 5.000000e-01 : f32
    %163 = vector.broadcast %cst_60 : f32 to vector<8x256xf32>
    %164 = arith.addf %162, %163 : vector<8x256xf32>
    %165 = arith.select %33, %160, %164 : vector<8x256xi1>, vector<8x256xf32>
    %166 = vector.extract_strided_slice %165 {offsets = [0, 0], sizes = [8, 64], strides = [1, 1]} : vector<8x256xf32> to vector<8x64xf32>
    %167 = vector.extract_strided_slice %165 {offsets = [0, 64], sizes = [8, 64], strides = [1, 1]} : vector<8x256xf32> to vector<8x64xf32>
    %168 = vector.extract_strided_slice %165 {offsets = [0, 128], sizes = [8, 64], strides = [1, 1]} : vector<8x256xf32> to vector<8x64xf32>
    %169 = vector.extract_strided_slice %165 {offsets = [0, 192], sizes = [8, 64], strides = [1, 1]} : vector<8x256xf32> to vector<8x64xf32>
    %170 = arith.mulf %167, %144 : vector<8x64xf32>
    %171 = arith.mulf %166, %168 : vector<8x64xf32>
    %172 = arith.addf %170, %171 : vector<8x64xf32>
    %173 = math.tanh %172 : vector<8x64xf32>
    %174 = arith.mulf %169, %173 : vector<8x64xf32>
    %c5_i32 = arith.constant 5 : i32
    %175 = arith.index_cast %c5_i32 : i32 to index
    %c0_61 = arith.constant 0 : index
    %c0_62 = arith.constant 0 : index
    %176 = vector.load %arg8[%175, %c0_61, %c0_62] : memref<8x8x256xf32, #tpu.memory_space<vmem>>, vector<1x8x256xf32>
    %177 = vector.shape_cast %176 : vector<1x8x256xf32> to vector<8x256xf32>
    %c7_i32_63 = arith.constant 7 : i32
    %178 = arith.subi %c7_i32_63, %c5_i32 : i32
    %179 = arith.index_cast %178 : i32 to index
    %c0_64 = arith.constant 0 : index
    %c0_65 = arith.constant 0 : index
    %180 = vector.load %arg8[%179, %c0_64, %c0_65] : memref<8x8x256xf32, #tpu.memory_space<vmem>>, vector<1x8x256xf32>
    %181 = vector.shape_cast %180 : vector<1x8x256xf32> to vector<8x256xf32>
    %182 = arith.select %28, %177, %181 : vector<8x256xi1>, vector<8x256xf32>
    %cst_66 = arith.constant dense<0.000000e+00> : vector<8x256xf32>
    %183 = tpu.matmul %174, %9, %cst_66 {dimension_numbers = #tpu.dot_dimension_numbers<[1], [0], [0], [1], [0, 0, 1, 1], [], []>} : vector<8x64xf32>, vector<64x256xf32>, vector<8x256xf32> -> vector<8x256xf32>
    %184 = arith.addf %182, %183 : vector<8x256xf32>
    %cst_67 = arith.constant 5.000000e-01 : f32
    %185 = vector.broadcast %cst_67 : f32 to vector<8x256xf32>
    %186 = arith.mulf %185, %184 : vector<8x256xf32>
    %187 = arith.select %33, %184, %186 : vector<8x256xi1>, vector<8x256xf32>
    %188 = math.tanh %187 : vector<8x256xf32>
    %cst_68 = arith.constant 5.000000e-01 : f32
    %189 = vector.broadcast %cst_68 : f32 to vector<8x256xf32>
    %190 = arith.mulf %189, %188 : vector<8x256xf32>
    %cst_69 = arith.constant 5.000000e-01 : f32
    %191 = vector.broadcast %cst_69 : f32 to vector<8x256xf32>
    %192 = arith.addf %190, %191 : vector<8x256xf32>
    %193 = arith.select %33, %188, %192 : vector<8x256xi1>, vector<8x256xf32>
    %194 = vector.extract_strided_slice %193 {offsets = [0, 0], sizes = [8, 64], strides = [1, 1]} : vector<8x256xf32> to vector<8x64xf32>
    %195 = vector.extract_strided_slice %193 {offsets = [0, 64], sizes = [8, 64], strides = [1, 1]} : vector<8x256xf32> to vector<8x64xf32>
    %196 = vector.extract_strided_slice %193 {offsets = [0, 128], sizes = [8, 64], strides = [1, 1]} : vector<8x256xf32> to vector<8x64xf32>
    %197 = vector.extract_strided_slice %193 {offsets = [0, 192], sizes = [8, 64], strides = [1, 1]} : vector<8x256xf32> to vector<8x64xf32>
    %198 = arith.mulf %195, %172 : vector<8x64xf32>
    %199 = arith.mulf %194, %196 : vector<8x64xf32>
    %200 = arith.addf %198, %199 : vector<8x64xf32>
    %201 = math.tanh %200 : vector<8x64xf32>
    %202 = arith.mulf %197, %201 : vector<8x64xf32>
    %c6_i32 = arith.constant 6 : i32
    %203 = arith.index_cast %c6_i32 : i32 to index
    %c0_70 = arith.constant 0 : index
    %c0_71 = arith.constant 0 : index
    %204 = vector.load %arg8[%203, %c0_70, %c0_71] : memref<8x8x256xf32, #tpu.memory_space<vmem>>, vector<1x8x256xf32>
    %205 = vector.shape_cast %204 : vector<1x8x256xf32> to vector<8x256xf32>
    %c7_i32_72 = arith.constant 7 : i32
    %206 = arith.subi %c7_i32_72, %c6_i32 : i32
    %207 = arith.index_cast %206 : i32 to index
    %c0_73 = arith.constant 0 : index
    %c0_74 = arith.constant 0 : index
    %208 = vector.load %arg8[%207, %c0_73, %c0_74] : memref<8x8x256xf32, #tpu.memory_space<vmem>>, vector<1x8x256xf32>
    %209 = vector.shape_cast %208 : vector<1x8x256xf32> to vector<8x256xf32>
    %210 = arith.select %28, %205, %209 : vector<8x256xi1>, vector<8x256xf32>
    %cst_75 = arith.constant dense<0.000000e+00> : vector<8x256xf32>
    %211 = tpu.matmul %202, %9, %cst_75 {dimension_numbers = #tpu.dot_dimension_numbers<[1], [0], [0], [1], [0, 0, 1, 1], [], []>} : vector<8x64xf32>, vector<64x256xf32>, vector<8x256xf32> -> vector<8x256xf32>
    %212 = arith.addf %210, %211 : vector<8x256xf32>
    %cst_76 = arith.constant 5.000000e-01 : f32
    %213 = vector.broadcast %cst_76 : f32 to vector<8x256xf32>
    %214 = arith.mulf %213, %212 : vector<8x256xf32>
    %215 = arith.select %33, %212, %214 : vector<8x256xi1>, vector<8x256xf32>
    %216 = math.tanh %215 : vector<8x256xf32>
    %cst_77 = arith.constant 5.000000e-01 : f32
    %217 = vector.broadcast %cst_77 : f32 to vector<8x256xf32>
    %218 = arith.mulf %217, %216 : vector<8x256xf32>
    %cst_78 = arith.constant 5.000000e-01 : f32
    %219 = vector.broadcast %cst_78 : f32 to vector<8x256xf32>
    %220 = arith.addf %218, %219 : vector<8x256xf32>
    %221 = arith.select %33, %216, %220 : vector<8x256xi1>, vector<8x256xf32>
    %222 = vector.extract_strided_slice %221 {offsets = [0, 0], sizes = [8, 64], strides = [1, 1]} : vector<8x256xf32> to vector<8x64xf32>
    %223 = vector.extract_strided_slice %221 {offsets = [0, 64], sizes = [8, 64], strides = [1, 1]} : vector<8x256xf32> to vector<8x64xf32>
    %224 = vector.extract_strided_slice %221 {offsets = [0, 128], sizes = [8, 64], strides = [1, 1]} : vector<8x256xf32> to vector<8x64xf32>
    %225 = vector.extract_strided_slice %221 {offsets = [0, 192], sizes = [8, 64], strides = [1, 1]} : vector<8x256xf32> to vector<8x64xf32>
    %226 = arith.mulf %223, %200 : vector<8x64xf32>
    %227 = arith.mulf %222, %224 : vector<8x64xf32>
    %228 = arith.addf %226, %227 : vector<8x64xf32>
    %229 = math.tanh %228 : vector<8x64xf32>
    %230 = arith.mulf %225, %229 : vector<8x64xf32>
    %c7_i32_79 = arith.constant 7 : i32
    %231 = arith.index_cast %c7_i32_79 : i32 to index
    %c0_80 = arith.constant 0 : index
    %c0_81 = arith.constant 0 : index
    %232 = vector.load %arg8[%231, %c0_80, %c0_81] : memref<8x8x256xf32, #tpu.memory_space<vmem>>, vector<1x8x256xf32>
    %233 = vector.shape_cast %232 : vector<1x8x256xf32> to vector<8x256xf32>
    %c7_i32_82 = arith.constant 7 : i32
    %234 = arith.subi %c7_i32_82, %c7_i32_79 : i32
    %235 = arith.index_cast %234 : i32 to index
    %c0_83 = arith.constant 0 : index
    %c0_84 = arith.constant 0 : index
    %236 = vector.load %arg8[%235, %c0_83, %c0_84] : memref<8x8x256xf32, #tpu.memory_space<vmem>>, vector<1x8x256xf32>
    %237 = vector.shape_cast %236 : vector<1x8x256xf32> to vector<8x256xf32>
    %238 = arith.select %28, %233, %237 : vector<8x256xi1>, vector<8x256xf32>
    %cst_85 = arith.constant dense<0.000000e+00> : vector<8x256xf32>
    %239 = tpu.matmul %230, %9, %cst_85 {dimension_numbers = #tpu.dot_dimension_numbers<[1], [0], [0], [1], [0, 0, 1, 1], [], []>} : vector<8x64xf32>, vector<64x256xf32>, vector<8x256xf32> -> vector<8x256xf32>
    %240 = arith.addf %238, %239 : vector<8x256xf32>
    %cst_86 = arith.constant 5.000000e-01 : f32
    %241 = vector.broadcast %cst_86 : f32 to vector<8x256xf32>
    %242 = arith.mulf %241, %240 : vector<8x256xf32>
    %243 = arith.select %33, %240, %242 : vector<8x256xi1>, vector<8x256xf32>
    %244 = math.tanh %243 : vector<8x256xf32>
    %cst_87 = arith.constant 5.000000e-01 : f32
    %245 = vector.broadcast %cst_87 : f32 to vector<8x256xf32>
    %246 = arith.mulf %245, %244 : vector<8x256xf32>
    %cst_88 = arith.constant 5.000000e-01 : f32
    %247 = vector.broadcast %cst_88 : f32 to vector<8x256xf32>
    %248 = arith.addf %246, %247 : vector<8x256xf32>
    %249 = arith.select %33, %244, %248 : vector<8x256xi1>, vector<8x256xf32>
    %250 = vector.extract_strided_slice %249 {offsets = [0, 0], sizes = [8, 64], strides = [1, 1]} : vector<8x256xf32> to vector<8x64xf32>
    %251 = vector.extract_strided_slice %249 {offsets = [0, 64], sizes = [8, 64], strides = [1, 1]} : vector<8x256xf32> to vector<8x64xf32>
    %252 = vector.extract_strided_slice %249 {offsets = [0, 128], sizes = [8, 64], strides = [1, 1]} : vector<8x256xf32> to vector<8x64xf32>
    %253 = vector.extract_strided_slice %249 {offsets = [0, 192], sizes = [8, 64], strides = [1, 1]} : vector<8x256xf32> to vector<8x64xf32>
    %254 = arith.mulf %251, %228 : vector<8x64xf32>
    %255 = arith.mulf %250, %252 : vector<8x64xf32>
    %256 = arith.addf %254, %255 : vector<8x64xf32>
    %257 = math.tanh %256 : vector<8x64xf32>
    %258 = arith.mulf %253, %257 : vector<8x64xf32>
    %c8_i32 = arith.constant 8 : i32
    %c0_89 = arith.constant 0 : index
    %c0_90 = arith.constant 0 : index
    %259 = vector.load %arg5[%c0_89, %c0_90] : memref<64x128xf32, #tpu.memory_space<vmem>>, vector<64x128xf32>
    %cst_91 = arith.constant dense<0.000000e+00> : vector<8x128xf32>
    %260 = tpu.matmul %258, %259, %cst_91 {dimension_numbers = #tpu.dot_dimension_numbers<[1], [0], [0], [1], [0, 0, 1, 1], [], []>} : vector<8x64xf32>, vector<64x128xf32>, vector<8x128xf32> -> vector<8x128xf32>
    %c0_92 = arith.constant 0 : index
    %c0_93 = arith.constant 0 : index
    %261 = vector.load %arg6[%c0_92, %c0_93] : memref<1x128xf32, #tpu.memory_space<vmem>>, vector<1x128xf32>
    %262 = vector.broadcast %261 : vector<1x128xf32> to vector<8x128xf32>
    %263 = arith.addf %260, %262 : vector<8x128xf32>
    %c0_94 = arith.constant 0 : index
    %c0_95 = arith.constant 0 : index
    %264 = vector.load %arg7[%c0_94, %c0_95] : memref<8x128xf32, #tpu.memory_space<vmem>>, vector<8x128xf32>
    tpu.vector_store %arg7[%c0_94, %c0_95], %263 {strides = array<i32>} : memref<8x128xf32, #tpu.memory_space<vmem>>, vector<8x128xf32>,
    return
  }
  func.func @transform_0(%arg0: i32) -> (i32, i32, i32) {
    %c0_i32 = arith.constant 0 : i32
    %c0_i32_0 = arith.constant 0 : i32
    %c0_i32_1 = arith.constant 0 : i32
    return %c0_i32, %arg0, %c0_i32_0 : i32, i32, i32
  }
  func.func @transform_1(%arg0: i32) -> (i32, i32) {
    %c0_i32 = arith.constant 0 : i32
    %c0_i32_0 = arith.constant 0 : i32
    %c0_i32_1 = arith.constant 0 : i32
    return %c0_i32, %c0_i32_0 : i32, i32
  }
  func.func @transform_2(%arg0: i32) -> (i32, i32) {
    %c0_i32 = arith.constant 0 : i32
    %c0_i32_0 = arith.constant 0 : i32
    %c0_i32_1 = arith.constant 0 : i32
    return %c0_i32, %c0_i32_0 : i32, i32
  }
  func.func @transform_3(%arg0: i32) -> (i32, i32) {
    %c0_i32 = arith.constant 0 : i32
    %c0_i32_0 = arith.constant 0 : i32
    %c0_i32_1 = arith.constant 0 : i32
    return %c0_i32, %c0_i32_0 : i32, i32
  }
  func.func @transform_4(%arg0: i32) -> (i32, i32) {
    %c0_i32 = arith.constant 0 : i32
    %c0_i32_0 = arith.constant 0 : i32
    %c0_i32_1 = arith.constant 0 : i32
    return %c0_i32, %c0_i32_0 : i32, i32
  }
  func.func @transform_5(%arg0: i32) -> (i32, i32) {
    %c0_i32 = arith.constant 0 : i32
    %c0_i32_0 = arith.constant 0 : i32
    %c0_i32_1 = arith.constant 0 : i32
    return %c0_i32, %c0_i32_0 : i32, i32
  }
  func.func @transform_6(%arg0: i32) -> (i32, i32) {
    %c0_i32 = arith.constant 0 : i32
    %c0_i32_0 = arith.constant 0 : i32
    return %arg0, %c0_i32 : i32, i32
  }
}

</mosaic_0001>

<bundles_post_ra>
// kernel: tpu_custom_call.1
= control target key start
LH: loop header
LB: loop body
LE: loop exit
PB: predicated region body
PF: predicated region fallthrough
CT: control target
= control target key end

     0   :  { %11 = vsyncpa [#allocation4], 0  ;;  %s2077_s0 = inlined_call_operand.hbm [shape: f32[8,8,16], index: 0, kind: input, shape index: {}]   ;;  %s2078_s1 = inlined_call_operand.hbm [shape: f32[16,256], index: 1, kind: input, shape index: {}]   ;;  %s2079_s2 = inlined_call_operand.vmem [shape: f32[1,256], index: 2, kind: input, shape index: {}]   ;;  %s2080_s3 = inlined_call_operand.hbm [shape: f32[64,256], index: 3, kind: input, shape index: {}]   ;;  %s2081_s4 = inlined_call_operand.hbm [shape: f32[64,128], index: 4, kind: input, shape index: {}]   ;;  %s2082_s5 = inlined_call_operand.vmem [shape: f32[1,128], index: 5, kind: input, shape index: {}]   ;;  %s2083_s6 = inlined_call_operand.hbm [shape: f32[8,128], index: 6, kind: output, shape index: {}]  }
   0x1   :  { %12 = vsyncpa [#allocation7], 0 }
   0x2   :  { %13 = vsyncpa [#allocation10], 0 }
   0x3   :  { %14 = vsyncpa [#allocation5], 0  ;;  %s1614_s21 = smov [#allocation6]   ;;  %s1496_s25 = scalar_lea.hbm %s2078_s1, 512 }
   0x4   :  { %s32_s22 = sshll.u32 %s1614_s21, 4  ;;  %p1497_p0 = scmp.ne.s32.totalorder %s2078_s1, %s1496_s25  ;;  %s33_s22 = int_to_ptr.vmem [resolvable:$true] %s32_s22 }
   0x5   :  { %p1500_p1 = scmp.lt.u32.totalorder %s1496_s25, %s2078_s1 }
   0x7   :  { %p1502_p2 = pnand %p1500_p1, %p1497_p0 }
   0x9   :  { %1505 = shalt.err (!%p1502_p2)
}
   0xa   :  { %s1506_s30 = scalar_lea.vmem %s33_s22, 512  ;;  %p1511_p4 = scmp.lt.s32.totalorder %s33_s22, %s33_s22 }
   0xb   :  { %p1507_p3 = scmp.ne.s32.totalorder %s33_s22, %s1506_s30  ;;  %p1512_p5 = scmp.lt.s32.totalorder %s1506_s30, %s1506_s30 }
   0xd   :  { %p1513_p6 = por %p1512_p5, %p1511_p4 }
   0xf   :  { %p1514_p7 = pnand %p1513_p6, %p1507_p3 }
  0x11   :  { %1517 = shalt.err (!%p1514_p7)
}
  0x12   :  { %s1615_s7 = smov 256   ;;  %s1616_s8 = smov 16  }
  0x13   :  { %38 = dma.hbm_to_vmem [thread:$0]  %s2078_s1, 512, %s33_s22, [#allocation7], %s1615_s7, %s1615_s7, %s1616_s8  }
  0x14   :  { %s1617_s11 = smov [#allocation3]   ;;  %s1518_s15 = scalar_lea.hbm %s2077_s0, 1024 }
  0x15   :  { %s20_s12 = sshll.u32 %s1617_s11, 4  ;;  %p1519_p8 = scmp.ne.s32.totalorder %s2077_s0, %s1518_s15  ;;  %s21_s12 = int_to_ptr.vmem [resolvable:$true] %s20_s12 }
  0x16   :  { %p1522_p9 = scmp.lt.u32.totalorder %s1518_s15, %s2077_s0 }
  0x18   :  { %p1524_p10 = pnand %p1522_p9, %p1519_p8 }
  0x1a   :  { %1527 = shalt.err (!%p1524_p10)
}
  0x1b   :  { %s1528_s20 = scalar_lea.vmem %s21_s12, 1024  ;;  %p1533_p12 = scmp.lt.s32.totalorder %s21_s12, %s21_s12 }
  0x1c   :  { %p1529_p11 = scmp.ne.s32.totalorder %s21_s12, %s1528_s20  ;;  %p1534_p13 = scmp.lt.s32.totalorder %s1528_s20, %s1528_s20 }
  0x1e   :  { %p1535_p0 = por %p1534_p13, %p1533_p12 }
  0x20   :  { %p1536_p1 = pnand %p1535_p0, %p1529_p11 }
  0x22   :  { %1539 = shalt.err (!%p1536_p1)
}
  0x23   :  { %s1618_s1 = smov 128   ;;  %s1619_s21 = smov 8  }
  0x24   :  { %26 = dma.hbm_to_vmem [thread:$0]  %s2077_s0, 1024, %s21_s12, [#allocation4], %s1618_s1, %s1618_s1, %s1619_s21  }
  0x25   :  { %s1620_s24 = smov [#allocation8]   ;;  %s1621_s26 = smov [#allocation9]  }
  0x26   :  { %s46_s25 = sshll.u32 %s1620_s24, 4  ;;  %s58_s27 = sshll.u32 %s1621_s26, 4  ;;  %s47_s25 = int_to_ptr.vmem [resolvable:$true] %s46_s25  ;;  %s1692_s27 = int_to_ptr.vmem [resolvable:$true] %s58_s27 }
  0x27   :  { %s1540_s30 = scalar_lea.hbm %s2080_s3, 2048 }
  0x28   :  { %p1541_p2 = scmp.ne.s32.totalorder %s2080_s3, %s1540_s30  ;;  %p1544_p3 = scmp.lt.u32.totalorder %s1540_s30, %s2080_s3 }
  0x2a   :  { %p1546_p4 = pnand %p1544_p3, %p1541_p2 }
  0x2c   :  { %1549 = shalt.err (!%p1546_p4)
}
  0x2d   :  { %s1550_s0 = scalar_lea.vmem %s47_s25, 2048  ;;  %p1555_p6 = scmp.lt.s32.totalorder %s47_s25, %s47_s25 }
  0x2e   :  { %p1551_p5 = scmp.ne.s32.totalorder %s47_s25, %s1550_s0  ;;  %p1556_p7 = scmp.lt.s32.totalorder %s1550_s0, %s1550_s0 }
  0x30   :  { %p1557_p8 = por %p1556_p7, %p1555_p6 }
  0x32   :  { %p1558_p9 = pnand %p1557_p8, %p1551_p5 }
  0x34   :  { %1561 = shalt.err (!%p1558_p9)
}
  0x35   :  { %52 = dma.hbm_to_vmem [thread:$0]  %s2080_s3, 2048, %s47_s25, [#allocation7], %s1615_s7, %s1615_s7, %s1616_s8  }
  0x36   :  { %s1562_s17 = scalar_lea.hbm %s2081_s4, 1024 }
  0x37   :  { %p1563_p10 = scmp.ne.s32.totalorder %s2081_s4, %s1562_s17  ;;  %p1566_p11 = scmp.lt.u32.totalorder %s1562_s17, %s2081_s4 }
  0x39   :  { %p1568_p12 = pnand %p1566_p11, %p1563_p10 }
  0x3b   :  { %1571 = shalt.err (!%p1568_p12)
}
  0x3c   :  { %s1572_s23 = scalar_lea.vmem %s1692_s27, 1024  ;;  %p1577_p0 = scmp.lt.s32.totalorder %s1692_s27, %s1692_s27 }
  0x3d   :  { %p1573_p13 = scmp.ne.s32.totalorder %s1692_s27, %s1572_s23  ;;  %p1578_p1 = scmp.lt.s32.totalorder %s1572_s23, %s1572_s23 }
  0x3f   :  { %p1579_p2 = por %p1578_p1, %p1577_p0 }
  0x41   :  { %p1580_p3 = pnand %p1579_p2, %p1573_p13 }
  0x43   :  { %1583 = shalt.err (!%p1580_p3)
}
  0x44   :  { %64 = dma.hbm_to_vmem [thread:$0]  %s2081_s4, 1024, %s1692_s27, [#allocation10], %s1618_s1, %s1618_s1, %s1619_s21  }
  0x45   :  { %1606 = dma.done.wait [#allocation4], 1024  }
  0x46   :  { %1607 = vsyncadd [#allocation4], 4294966272 }
  0x47   :  { %1608 = dma.done.wait [#allocation7], 2560  }
  0x48   :  { %1609 = vsyncadd [#allocation7], 4294964736 }
  0x49   :  { %1610 = dma.done.wait [#allocation10], 1024  }
  0x4a   :  { %1611 = vsyncadd [#allocation10], 4294966272  ;;  %v1622_v0 = vmov 0.0   ;;  %v88_v1 = vld [vmem:[#allocation6 + $0x8] sm:$0xff]  ;;  %v90_v2 = vld [vmem:[#allocation6 + $0x18] sm:$0xff]  ;;  %vm103_vm0 = vcmask 130048   ;;  %v93_v39 = vlaneseq }
  0x4b   :  { %192 = vmatprep.mubr.f32.mxu0 %v1622_v0  ;;  %383 = vmatprep.mubr.f32.mxu1 %v1622_v0  ;;  %v87_v3 = vld [vmem:[#allocation6] sm:$0xff]  ;;  %v1291_v4 = vpack.c.bf16 %v90_v2, %v88_v1  ;;  %v89_v5 = vld [vmem:[#allocation6 + $0x10] sm:$0xff]  ;;  %v258_v7 = vld [vmem:[#allocation8 + $0x8] sm:$0xff]  ;;  %vm315_vm4 = vcmask 523264   ;;  %vm1625_vm5 = vmmov 0   ;;  %s1626_s24 = smov [#allocation11]  }
  0x4c   :  { %v1293_v6 = vpack.c.bf16 %v89_v5, %v87_v3  ;;  %v260_v8 = vld [vmem:[#allocation8 + $0x18] sm:$0xff]  ;;  %v257_v9 = vld [vmem:[#allocation8] sm:$0xff]  ;;  %v259_v10 = vld [vmem:[#allocation8 + $0x10] sm:$0xff]  ;;  %v94_v40 = vshrl.u32 %v93_v39, 7  ;;  %v274_v51 = vand.u32 127, %v93_v39  ;;  %s1235_s25 = sshll.u32 %s1626_s24, 4  ;;  %s1236_s25 = int_to_ptr.vmem [resolvable:$true] %s1235_s25 }
  0x4d   :  { %1292 = vmatprep.subr.bf16.mxu0 %v1291_v4  ;;  %v79_v11 = vld [vmem:[#allocation3] sm:$0xff]  ;;  %v1731_v12 = vpack.c.bf16 %v260_v8, %v258_v7  ;;  %v1733_v13 = vpack.c.bf16 %v259_v10, %v257_v9  ;;  %v262_v14 = vld [vmem:[#allocation8 + $0x28] sm:$0xff]  ;;  %v264_v15 = vld [vmem:[#allocation8 + $0x38] sm:$0xff]  ;;  %s1584_s26 = scalar_lea.vmem %s1236_s25, 128  ;;  %p1589_p5 = scmp.lt.s32.totalorder %s1236_s25, %s1236_s25 }
  0x4e   :  { %1294 = vmatpush1.bf16.msra.mxu0 %v1293_v6  ;;  %v1735_v16 = vpack.c.bf16 %v264_v15, %v262_v14  ;;  %v261_v17 = vld [vmem:[#allocation8 + $0x20] sm:$0xff]  ;;  %v263_v18 = vld [vmem:[#allocation8 + $0x30] sm:$0xff]  ;;  %v266_v19 = vld [vmem:[#allocation8 + $0x48] sm:$0xff]  ;;  %v95_v41 = vsub.s32 0, %v94_v40  ;;  %v99_v44 = vsub.s32 1, %v94_v40  ;;  %v1800_v56 = vadd.s32 128, %v274_v51  ;;  %p1585_p4 = scmp.ne.s32.totalorder %s1236_s25, %s1584_s26  ;;  %p1590_p6 = scmp.lt.s32.totalorder %s1584_s26, %s1584_s26 }
  0x4f   :  { %1296 = vmatprep.subr.bf16.mxu1 %v1731_v12  ;;  %v268_v20 = vld [vmem:[#allocation8 + $0x58] sm:$0xff]  ;;  %1328 = vmatprep.subr.bf16.mxu0 %v1731_v12  ;;  %v1741_v21 = vpack.c.bf16 %v263_v18, %v261_v17  ;;  %v80_v22 = vld [vmem:[#allocation3 + $0x8] sm:$0xff]  ;;  %v265_v24 = vld [vmem:[#allocation8 + $0x40] sm:$0xff]  ;;  %v280_v59 = vand.u32 63, %v274_v51 }
  0x50   :  { %1298 = vmatpush1.bf16.msra.mxu1 %v1733_v13  ;;  %v1745_v23 = vpack.c.bf16 %v268_v20, %v266_v19  ;;  %v267_v25 = vld [vmem:[#allocation8 + $0x50] sm:$0xff]  ;;  %v270_v26 = vld [vmem:[#allocation8 + $0x68] sm:$0xff]  ;;  %v272_v27 = vld [vmem:[#allocation8 + $0x78] sm:$0xff]  ;;  %v287_v62 = vand.u32 63, %v1800_v56  ;;  %vm305_vm3 = vcmp.lt.s32.totalorder %v1800_v56, 192  ;;  %p1591_p7 = por %p1590_p6, %p1589_p5 }
  0x51   :  { %1246 = vmatmul.mubr.msk.f32.vlgmr.msra.gmra.mrb[0].mxu0 %vm103_vm0, %v79_v11  ;;  %1300 = vmatprep.subr.bf16.mxu1 %v1735_v16  ;;  %v1751_v28 = vpack.c.bf16 %v267_v25, %v265_v24  ;;  %v81_v29 = vld [vmem:[#allocation3 + $0x10] sm:$0xff]  ;;  %v1755_v30 = vpack.c.bf16 %v272_v27, %v270_v26  ;;  %v269_v31 = vld [vmem:[#allocation8 + $0x60] sm:$0xff]  ;;  %v82_v34 = vld [vmem:[#allocation3 + $0x18] sm:$0xff]  ;;  %vm1809_vm1 = vcmp.lt.s32.totalorder %v280_v59, 32 }
  0x52   :  { %198 = vmatprep.mubr.f32.mxu0 %v1622_v0  ;;  %1330 = vmatpush1.bf16.msra.mxu0 %v1733_v13  ;;  %v271_v32 = vld [vmem:[#allocation8 + $0x70] sm:$0xff]  ;;  %v83_v35 = vld [vmem:[#allocation3 + $0x20] sm:$0xff]  ;;  %v84_v36 = vld [vmem:[#allocation3 + $0x28] sm:$0xff]  ;;  %vm1815_vm2 = vcmp.lt.s32.totalorder %v287_v62, 32  ;;  %p1592_p8 = pnand %p1591_p7, %p1585_p4 }
  0x53   :  { %1332 = vmatprep.subr.bf16.mxu0 %v1735_v16  ;;  %v1761_v33 = vpack.c.bf16 %v271_v32, %v269_v31  ;;  %v85_v37 = vld [vmem:[#allocation3 + $0x30] sm:$0xff]  ;;  %v86_v38 = vld [vmem:[#allocation3 + $0x38] sm:$0xff]  ;;  %v91_v42 = vld [vmem:[%s2079_s2] sm:$0x3]  ;;  %s1623_s2 = smov 64  }
  0x54   :  { %1302 = vmatpush1.bf16.msra.mxu1 %v1741_v21  ;;  %v96_v46 = vrot.slane %v91_v42, %v95_v41  ;;  %v100_v47 = vrot.slane %v91_v42, %v99_v44 }
  0x55   :  { %1247 = vmatmul.mubr.msk.f32.gmra.mrb[2].mxu0 %vm103_vm0, %v80_v22  ;;  %1304 = vmatprep.subr.bf16.mxu1 %v1745_v23 }
  0x56   :  { %204 = vmatprep.mubr.f32.mxu0 %v1622_v0  ;;  %1334 = vmatpush1.bf16.msra.mxu0 %v1741_v21 }
  0x57   :  { %1336 = vmatprep.subr.bf16.mxu0 %v1745_v23 }
  0x58   :  { %1306 = vmatpush1.bf16.msra.mxu1 %v1751_v28 }
  0x59   :  { %1248 = vmatmul.mubr.msk.f32.gmra.mrb[4].mxu0 %vm103_vm0, %v81_v29  ;;  %1308 = vmatprep.subr.bf16.mxu1 %v1755_v30 }
  0x5a   :  { %210 = vmatprep.mubr.f32.mxu0 %v1622_v0  ;;  %1338 = vmatpush1.bf16.msra.mxu0 %v1751_v28 }
  0x5b   :  { %1340 = vmatprep.subr.bf16.mxu0 %v1755_v30 }
  0x5c   :  { %1310 = vmatpush1.bf16.msra.mxu1 %v1761_v33 }
  0x5d   :  { %1249 = vmatmul.mubr.msk.f32.gmra.mrb[6].mxu0 %vm103_vm0, %v82_v34  ;;  %1312 = vmatprep.subr.bf16.mxu1 %v1731_v12 }
  0x5e   :  { %216 = vmatprep.mubr.f32.mxu0 %v1622_v0  ;;  %1342 = vmatpush1.bf16.msra.mxu0 %v1761_v33 }
  0x5f   :  { %384 = vmatmul.mubr.f32.vlgmr.msra.gmra.mrb[0].mxu1 %v1622_v0  ;;  %1360 = vmatprep.subr.bf16.mxu0 %v1731_v12 }
  0x60   :  { %1314 = vmatpush1.bf16.msra.mxu1 %v1733_v13  ;;  %490 = vmatprep.mubr.f32.mxu1 %v1622_v0 }
  0x61   :  { %1250 = vmatmul.mubr.msk.f32.gmra.mrb[8].mxu0 %vm103_vm0, %v83_v35  ;;  %1316 = vmatprep.subr.bf16.mxu1 %v1735_v16 }
  0x62   :  { %222 = vmatprep.mubr.f32.mxu0 %v1622_v0 }
  0x64   :  { %1318 = vmatpush1.bf16.msra.mxu1 %v1741_v21 }
  0x65   :  { %1251 = vmatmul.mubr.msk.f32.gmra.mrb[10].mxu0 %vm103_vm0, %v84_v36  ;;  %1320 = vmatprep.subr.bf16.mxu1 %v1745_v23 }
  0x66   :  { %228 = vmatprep.mubr.f32.mxu0 %v1622_v0 }
  0x68   :  { %1322 = vmatpush1.bf16.msra.mxu1 %v1751_v28 }
  0x69   :  { %1252 = vmatmul.mubr.msk.f32.gmra.mrb[12].mxu0 %vm103_vm0, %v85_v37  ;;  %1324 = vmatprep.subr.bf16.mxu1 %v1755_v30 }
  0x6a   :  { %234 = vmatprep.mubr.f32.mxu0 %v1622_v0 }
  0x6c   :  { %1326 = vmatpush1.bf16.msra.mxu1 %v1761_v33 }
  0x6d   :  { %1253 = vmatmul.mubr.msk.f32.gmra.mrb[14].mxu0 %vm103_vm0, %v86_v38  ;;  %1344 = vmatprep.subr.bf16.mxu1 %v1731_v12 }
  0x6e   :  { %597 = vmatprep.mubr.f32.mxu0 %v1622_v0 }
 0x124   :  { %v194_v43 = vpop.f32.mrb[0].mxu0 }
 0x125   :  { %v196_v45 = vpop.f32.mrb[1].mxu0  ;;  %v1877_v38 = vadd.f32 %v194_v43, %v96_v46 }
 0x126   :  { %v1881_v41 = vadd.f32 %v196_v45, %v100_v47 }
 0x128   :  { %v200_v48 = vpop.f32.mrb[2].mxu0 }
 0x129   :  { %v1794_v49 = vadd.f32 %v200_v48, %v96_v46  ;;  %v202_v50 = vpop.f32.mrb[3].mxu0 }
 0x12a   :  { %v1796_v52 = vadd.f32 %v202_v50, %v100_v47 }
 0x12c   :  { %v206_v53 = vpop.f32.mrb[4].mxu0 }
 0x12d   :  { %v1798_v54 = vadd.f32 %v206_v53, %v96_v46  ;;  %v208_v55 = vpop.f32.mrb[5].mxu0 }
 0x12e   :  { %v1802_v57 = vadd.f32 %v208_v55, %v100_v47 }
 0x130   :  { %v212_v58 = vpop.f32.mrb[6].mxu0 }
 0x131   :  { %v1804_v60 = vadd.f32 %v212_v58, %v96_v46  ;;  %v214_v61 = vpop.f32.mrb[7].mxu0 }
 0x132   :  { %v1807_v63 = vadd.f32 %v214_v61, %v100_v47  ;;  %v385_v1 = vpop.f32.mrb[0].mxu1 }
 0x133   :  { %v387_v4 = vpop.f32.mrb[1].mxu1 }
 0x134   :  { %v218_v2 = vpop.f32.mrb[8].mxu0 }
 0x135   :  { %v1813_v5 = vadd.f32 %v218_v2, %v96_v46  ;;  %v220_v6 = vpop.f32.mrb[9].mxu0 }
 0x136   :  { %v1819_v8 = vadd.f32 %v220_v6, %v100_v47 }
 0x137   :  { %v633_v9 = vsel %vm1809_vm1, %v1804_v60, %v1813_v5  ;;  %v734_v10 = vsel %vm1809_vm1, %v1813_v5, %v1804_v60 }
 0x138   :  { %v224_v11 = vpop.f32.mrb[10].mxu0  ;;  %v634_v14 = vsel %vm1815_vm2, %v1807_v63, %v1819_v8  ;;  %v735_v15 = vsel %vm1815_vm2, %v1819_v8, %v1807_v63 }
 0x139   :  { %v1837_v17 = vadd.f32 %v224_v11, %v96_v46  ;;  %v226_v18 = vpop.f32.mrb[11].mxu0 }
 0x13a   :  { %v1839_v19 = vadd.f32 %v226_v18, %v100_v47 }
 0x13b   :  { %v526_v20 = vsel %vm1809_vm1, %v1798_v54, %v1837_v17  ;;  %v835_v22 = vsel %vm1809_vm1, %v1837_v17, %v1798_v54 }
 0x13c   :  { %v230_v24 = vpop.f32.mrb[12].mxu0  ;;  %v527_v25 = vsel %vm1815_vm2, %v1802_v57, %v1839_v19  ;;  %v836_v26 = vsel %vm1815_vm2, %v1839_v19, %v1802_v57 }
 0x13d   :  { %v1857_v27 = vadd.f32 %v230_v24, %v96_v46  ;;  %v232_v29 = vpop.f32.mrb[13].mxu0 }
 0x13e   :  { %v1859_v31 = vadd.f32 %v232_v29, %v100_v47 }
 0x13f   :  { %v419_v32 = vsel %vm1809_vm1, %v1794_v49, %v1857_v27  ;;  %v936_v34 = vsel %vm1809_vm1, %v1857_v27, %v1794_v49 }
 0x140   :  { %v236_v35 = vpop.f32.mrb[14].mxu0  ;;  %v420_v36 = vsel %vm1815_vm2, %v1796_v52, %v1859_v31  ;;  %v937_v37 = vsel %vm1815_vm2, %v1859_v31, %v1796_v52 }
 0x141   :  { %v1879_v39 = vadd.f32 %v236_v35, %v96_v46  ;;  %v238_v40 = vpop.f32.mrb[15].mxu0 }
 0x142   :  { %v1883_v42 = vadd.f32 %v238_v40, %v100_v47 }
 0x143   :  { %v313_v44 = vsel %vm1809_vm1, %v1877_v38, %v1879_v39  ;;  %v1037_v48 = vsel %vm1809_vm1, %v1879_v39, %v1877_v38 }
 0x144   :  { %v390_v50 = vadd.f32 %v385_v1, %v313_v44  ;;  %v314_v43 = vsel %vm1815_vm2, %v1881_v41, %v1883_v42  ;;  %v1038_v45 = vsel %vm1815_vm2, %v1883_v42, %v1881_v41  ;;  %v1138_v41 = vld [vmem:[#allocation9] sm:$0xff]  ;;  %v1139_v42 = vld [vmem:[#allocation9 + $0x8] sm:$0xff] }
 0x145   :  { %v391_v46 = vadd.f32 %v387_v4, %v314_v43 }
 0x146   :  { %v392_v47 = vmul.f32 0.5, %v390_v50 }
 0x147   :  { %v393_v51 = vmul.f32 0.5, %v391_v46 }
 0x148   :  { %1448 = vtanh.f32 %v392_v47 }
 0x149   :  { %v395_v53 = vsel %vm305_vm3, %v391_v46, %v393_v51 }
 0x14a   :  { %1450 = vtanh.f32 %v395_v53 }
 0x152   :  { %v1449_v55 = vpop.eup %1448 }
 0x153   :  { %v398_v59 = vmul.f32 0.5, %v1449_v55 }
 0x154   :  { %v1451_v58 = vpop.eup %1450 }
 0x155   :  { %v399_v61 = vmul.f32 0.5, %v1451_v58  ;;  %v400_v1 = vadd.f32 0.5, %v398_v59 }
 0x157   :  { %v401_v62 = vadd.f32 0.5, %v399_v61  ;;  %v404_v4 = vmul.f32 0.0, %v400_v1 }
 0x159   :  { %v403_v2 = vsel %vm305_vm3, %v1451_v58, %v401_v62 }
 0x15a   :  { %v405_v6 = vmul.f32 %v403_v2, %v400_v1 }
 0x15c   :  { %407 = vrot.lane.b32.xlu0 %v405_v6, %s1623_s2 }
 0x1ce   :  { %v408_v11 = vpop.permute.xlu0 %407 }
 0x1cf   :  { %v410_v18 = vadd.f32 %v408_v11, %v404_v4 }
 0x1d1   :  { %1452 = vtanh.f32 %v410_v18 }
 0x1db   :  { %v1453_v24 = vpop.eup %1452 }
 0x1dc   :  { %v412_v29 = vmul.f32 %v1453_v24, %v403_v2 }
 0x1de   :  { %422 = vrot.lane.b32.xlu0 %v412_v29, %s1623_s2 }
 0x250   :  { %v423_v35 = vpop.permute.xlu0 %422 }
 0x251   :  { %1254 = vmatmul.mubr.msk.f32.vlgmr.msra.gmra.mrb[2].mxu1 %vm315_vm4, %v423_v35 }
 0x252   :  { %1346 = vmatpush1.bf16.msra.mxu1 %v1733_v13  ;;  %704 = vmatprep.mubr.f32.mxu1 %v1622_v0 }
 0x253   :  { %1348 = vmatprep.subr.bf16.mxu1 %v1735_v16 }
 0x256   :  { %1350 = vmatpush1.bf16.msra.mxu1 %v1741_v21 }
 0x257   :  { %1352 = vmatprep.subr.bf16.mxu1 %v1745_v23 }
 0x25a   :  { %1354 = vmatpush1.bf16.msra.mxu1 %v1751_v28 }
 0x25b   :  { %1356 = vmatprep.subr.bf16.mxu1 %v1755_v30 }
 0x25e   :  { %1358 = vmatpush1.bf16.msra.mxu1 %v1761_v33 }
 0x25f   :  { %1376 = vmatprep.subr.bf16.mxu1 %v1731_v12 }
 0x324   :  { %v492_v40 = vpop.f32.mrb[2].mxu1 }
 0x325   :  { %v497_v44 = vadd.f32 %v492_v40, %v419_v32  ;;  %v494_v50 = vpop.f32.mrb[3].mxu1 }
 0x326   :  { %v498_v43 = vadd.f32 %v494_v50, %v420_v36 }
 0x327   :  { %v499_v46 = vmul.f32 0.5, %v497_v44 }
 0x328   :  { %v500_v47 = vmul.f32 0.5, %v498_v43 }
 0x329   :  { %1454 = vtanh.f32 %v499_v46 }
 0x32a   :  { %v502_v51 = vsel %vm305_vm3, %v498_v43, %v500_v47 }
 0x32b   :  { %1456 = vtanh.f32 %v502_v51 }
 0x333   :  { %v1455_v53 = vpop.eup %1454 }
 0x334   :  { %v505_v58 = vmul.f32 0.5, %v1455_v53 }
 0x335   :  { %v1457_v55 = vpop.eup %1456 }
 0x336   :  { %v506_v59 = vmul.f32 0.5, %v1457_v55  ;;  %v507_v62 = vadd.f32 0.5, %v505_v58 }
 0x338   :  { %v508_v61 = vadd.f32 0.5, %v506_v59  ;;  %v511_v32 = vmul.f32 %v507_v62, %v410_v18 }
 0x33a   :  { %v510_v1 = vsel %vm305_vm3, %v1457_v55, %v508_v61 }
 0x33b   :  { %v512_v2 = vmul.f32 %v510_v1, %v507_v62 }
 0x33d   :  { %514 = vrot.lane.b32.xlu1 %v512_v2, %s1623_s2 }
 0x3af   :  { %v515_v36 = vpop.permute.xlu1 %514 }
 0x3b0   :  { %v517_v6 = vadd.f32 %v515_v36, %v511_v32 }
 0x3b2   :  { %1458 = vtanh.f32 %v517_v6 }
 0x3bc   :  { %v1459_v4 = vpop.eup %1458 }
 0x3bd   :  { %v519_v11 = vmul.f32 %v1459_v4, %v510_v1 }
 0x3bf   :  { %529 = vrot.lane.b32.xlu1 %v519_v11, %s1623_s2 }
 0x431   :  { %v530_v24 = vpop.permute.xlu1 %529 }
 0x432   :  { %1255 = vmatmul.mubr.msk.f32.vlgmr.msra.gmra.mrb[16].mxu0 %vm315_vm4, %v530_v24 }
 0x433   :  { %1362 = vmatpush1.bf16.msra.mxu0 %v1733_v13  ;;  %805 = vmatprep.mubr.f32.mxu0 %v1622_v0 }
 0x434   :  { %1364 = vmatprep.subr.bf16.mxu0 %v1735_v16 }
 0x437   :  { %1366 = vmatpush1.bf16.msra.mxu0 %v1741_v21 }
 0x438   :  { %1368 = vmatprep.subr.bf16.mxu0 %v1745_v23 }
 0x43b   :  { %1370 = vmatpush1.bf16.msra.mxu0 %v1751_v28 }
 0x43c   :  { %1372 = vmatprep.subr.bf16.mxu0 %v1755_v30 }
 0x43f   :  { %1374 = vmatpush1.bf16.msra.mxu0 %v1761_v33 }
 0x440   :  { %1392 = vmatprep.subr.bf16.mxu0 %v1731_v12 }
 0x505   :  { %v599_v18 = vpop.f32.mrb[16].mxu0 }
 0x506   :  { %v604_v29 = vadd.f32 %v599_v18, %v526_v20  ;;  %v601_v35 = vpop.f32.mrb[17].mxu0 }
 0x507   :  { %v605_v40 = vadd.f32 %v601_v35, %v527_v25 }
 0x508   :  { %v606_v44 = vmul.f32 0.5, %v604_v29 }
 0x509   :  { %v607_v50 = vmul.f32 0.5, %v605_v40 }
 0x50a   :  { %1460 = vtanh.f32 %v606_v44 }
 0x50b   :  { %v609_v43 = vsel %vm305_vm3, %v605_v40, %v607_v50 }
 0x50c   :  { %1462 = vtanh.f32 %v609_v43 }
 0x514   :  { %v1461_v46 = vpop.eup %1460 }
 0x515   :  { %v612_v51 = vmul.f32 0.5, %v1461_v46 }
 0x516   :  { %v1463_v47 = vpop.eup %1462 }
 0x517   :  { %v613_v53 = vmul.f32 0.5, %v1463_v47  ;;  %v614_v20 = vadd.f32 0.5, %v612_v51 }
 0x519   :  { %v615_v55 = vadd.f32 0.5, %v613_v53  ;;  %v618_v25 = vmul.f32 %v614_v20, %v517_v6 }
 0x51b   :  { %v617_v58 = vsel %vm305_vm3, %v1463_v47, %v615_v55 }
 0x51c   :  { %v619_v59 = vmul.f32 %v617_v58, %v614_v20 }
 0x51e   :  { %621 = vrot.lane.b32.xlu0 %v619_v59, %s1623_s2 }
 0x590   :  { %v622_v61 = vpop.permute.xlu0 %621 }
 0x591   :  { %v624_v62 = vadd.f32 %v622_v61, %v618_v25 }
 0x593   :  { %1464 = vtanh.f32 %v624_v62 }
 0x59d   :  { %v1465_v1 = vpop.eup %1464 }
 0x59e   :  { %v626_v2 = vmul.f32 %v1465_v1, %v617_v58 }
 0x5a0   :  { %636 = vrot.lane.b32.xlu1 %v626_v2, %s1623_s2 }
 0x612   :  { %v637_v32 = vpop.permute.xlu1 %636 }
 0x613   :  { %1256 = vmatmul.mubr.msk.f32.vlgmr.msra.gmra.mrb[4].mxu1 %vm315_vm4, %v637_v32 }
 0x614   :  { %1378 = vmatpush1.bf16.msra.mxu1 %v1733_v13  ;;  %906 = vmatprep.mubr.f32.mxu1 %v1622_v0 }
 0x615   :  { %1380 = vmatprep.subr.bf16.mxu1 %v1735_v16 }
 0x618   :  { %1382 = vmatpush1.bf16.msra.mxu1 %v1741_v21 }
 0x619   :  { %1384 = vmatprep.subr.bf16.mxu1 %v1745_v23 }
 0x61c   :  { %1386 = vmatpush1.bf16.msra.mxu1 %v1751_v28 }
 0x61d   :  { %1388 = vmatprep.subr.bf16.mxu1 %v1755_v30 }
 0x620   :  { %1390 = vmatpush1.bf16.msra.mxu1 %v1761_v33 }
 0x621   :  { %1408 = vmatprep.subr.bf16.mxu1 %v1731_v12 }
 0x6e6   :  { %v706_v36 = vpop.f32.mrb[4].mxu1 }
 0x6e7   :  { %v711_v6 = vadd.f32 %v706_v36, %v633_v9  ;;  %v708_v4 = vpop.f32.mrb[5].mxu1 }
 0x6e8   :  { %v712_v11 = vadd.f32 %v708_v4, %v634_v14 }
 0x6e9   :  { %v713_v24 = vmul.f32 0.5, %v711_v6 }
 0x6ea   :  { %v714_v18 = vmul.f32 0.5, %v712_v11 }
 0x6eb   :  { %1466 = vtanh.f32 %v713_v24 }
 0x6ec   :  { %v716_v12 = vsel %vm305_vm3, %v712_v11, %v714_v18 }
 0x6ed   :  { %1468 = vtanh.f32 %v716_v12 }
 0x6f5   :  { %v1467_v29 = vpop.eup %1466 }
 0x6f6   :  { %v719_v40 = vmul.f32 0.5, %v1467_v29 }
 0x6f7   :  { %v1469_v35 = vpop.eup %1468 }
 0x6f8   :  { %v720_v44 = vmul.f32 0.5, %v1469_v35  ;;  %v721_v9 = vadd.f32 0.5, %v719_v40 }
 0x6fa   :  { %v722_v50 = vadd.f32 0.5, %v720_v44  ;;  %v725_v14 = vmul.f32 %v721_v9, %v624_v62 }
 0x6fc   :  { %v724_v43 = vsel %vm305_vm3, %v1469_v35, %v722_v50 }
 0x6fd   :  { %v726_v46 = vmul.f32 %v724_v43, %v721_v9 }
 0x6ff   :  { %728 = vrot.lane.b32.xlu0 %v726_v46, %s1623_s2 }
 0x771   :  { %v729_v47 = vpop.permute.xlu0 %728 }
 0x772   :  { %v731_v51 = vadd.f32 %v729_v47, %v725_v14 }
 0x774   :  { %1470 = vtanh.f32 %v731_v51 }
 0x77e   :  { %v1471_v53 = vpop.eup %1470 }
 0x77f   :  { %v733_v55 = vmul.f32 %v1471_v53, %v724_v43 }
 0x781   :  { %737 = vrot.lane.b32.xlu1 %v733_v55, %s1623_s2 }
 0x7f3   :  { %v738_v20 = vpop.permute.xlu1 %737 }
 0x7f4   :  { %1257 = vmatmul.mubr.msk.f32.vlgmr.msra.gmra.mrb[18].mxu0 %vm315_vm4, %v738_v20 }
 0x7f5   :  { %1394 = vmatpush1.bf16.msra.mxu0 %v1733_v13  ;;  %1007 = vmatprep.mubr.f32.mxu0 %v1622_v0 }
 0x7f6   :  { %1396 = vmatprep.subr.bf16.mxu0 %v1735_v16 }
 0x7f9   :  { %1398 = vmatpush1.bf16.msra.mxu0 %v1741_v21 }
 0x7fa   :  { %1400 = vmatprep.subr.bf16.mxu0 %v1745_v23 }
 0x7fd   :  { %1402 = vmatpush1.bf16.msra.mxu0 %v1751_v28 }
 0x7fe   :  { %1404 = vmatprep.subr.bf16.mxu0 %v1755_v30 }
 0x801   :  { %1406 = vmatpush1.bf16.msra.mxu0 %v1761_v33 }
 0x8c7   :  { %v807_v58 = vpop.f32.mrb[18].mxu0 }
 0x8c8   :  { %v812_v59 = vadd.f32 %v807_v58, %v734_v10  ;;  %v809_v25 = vpop.f32.mrb[19].mxu0 }
 0x8c9   :  { %v813_v61 = vadd.f32 %v809_v25, %v735_v15 }
 0x8ca   :  { %v814_v62 = vmul.f32 0.5, %v812_v59 }
 0x8cb   :  { %v815_v1 = vmul.f32 0.5, %v813_v61 }
 0x8cc   :  { %1472 = vtanh.f32 %v814_v62 }
 0x8cd   :  { %v817_v2 = vsel %vm305_vm3, %v813_v61, %v815_v1 }
 0x8ce   :  { %1474 = vtanh.f32 %v817_v2 }
 0x8d6   :  { %v1473_v32 = vpop.eup %1472 }
 0x8d7   :  { %v820_v6 = vmul.f32 0.5, %v1473_v32 }
 0x8d8   :  { %v1475_v36 = vpop.eup %1474 }
 0x8d9   :  { %v821_v4 = vmul.f32 0.5, %v1475_v36  ;;  %v822_v5 = vadd.f32 0.5, %v820_v6 }
 0x8db   :  { %v823_v60 = vadd.f32 0.5, %v821_v4  ;;  %v826_v63 = vmul.f32 %v822_v5, %v731_v51 }
 0x8dd   :  { %v825_v10 = vsel %vm305_vm3, %v1475_v36, %v823_v60 }
 0x8de   :  { %v827_v11 = vmul.f32 %v825_v10, %v822_v5 }
 0x8e0   :  { %829 = vrot.lane.b32.xlu0 %v827_v11, %s1623_s2 }
 0x952   :  { %v830_v8 = vpop.permute.xlu0 %829 }
 0x953   :  { %v832_v15 = vadd.f32 %v830_v8, %v826_v63 }
 0x955   :  { %1476 = vtanh.f32 %v832_v15 }
 0x95f   :  { %v1477_v24 = vpop.eup %1476 }
 0x960   :  { %v834_v18 = vmul.f32 %v1477_v24, %v825_v10 }
 0x962   :  { %838 = vrot.lane.b32.xlu1 %v834_v18, %s1623_s2  ;;  %v1624_v18 = vmov 0.0|0.0  }
 0x963   :  { %1423 = vmatprep.subr.bf16.mxu0 %v1624_v18 }
 0x9d4   :  { %v839_v12 = vpop.permute.xlu1 %838 }
 0x9d5   :  { %1258 = vmatmul.mubr.msk.f32.vlgmr.msra.gmra.mrb[6].mxu1 %vm315_vm4, %v839_v12  ;;  %v1424_v12 = vpack.c.bf16 %v1139_v42, %v1138_v41 }
 0x9d6   :  { %1410 = vmatpush1.bf16.msra.mxu1 %v1733_v13  ;;  %1108 = vmatprep.mubr.f32.mxu1 %v1622_v0 }
 0x9d7   :  { %1412 = vmatprep.subr.bf16.mxu1 %v1735_v16 }
 0x9da   :  { %1414 = vmatpush1.bf16.msra.mxu1 %v1741_v21 }
 0x9db   :  { %1416 = vmatprep.subr.bf16.mxu1 %v1745_v23 }
 0x9de   :  { %1418 = vmatpush1.bf16.msra.mxu1 %v1751_v28 }
 0x9df   :  { %1420 = vmatprep.subr.bf16.mxu1 %v1755_v30 }
 0x9e2   :  { %1422 = vmatpush1.bf16.msra.mxu1 %v1761_v33 }
 0xaa8   :  { %v908_v29 = vpop.f32.mrb[6].mxu1 }
 0xaa9   :  { %v913_v13 = vadd.f32 %v908_v29, %v835_v22  ;;  %v910_v35 = vpop.f32.mrb[7].mxu1  ;;  %v1141_v29 = vld [vmem:[#allocation9 + $0x18] sm:$0xff] }
 0xaaa   :  { %v914_v16 = vadd.f32 %v910_v35, %v836_v26  ;;  %v1142_v35 = vld [vmem:[#allocation9 + $0x20] sm:$0xff] }
 0xaab   :  { %v915_v21 = vmul.f32 0.5, %v913_v13 }
 0xaac   :  { %v916_v23 = vmul.f32 0.5, %v914_v16 }
 0xaad   :  { %1478 = vtanh.f32 %v915_v21  ;;  %v1144_v21 = vld [vmem:[#allocation9 + $0x30] sm:$0xff] }
 0xaae   :  { %v918_v28 = vsel %vm305_vm3, %v914_v16, %v916_v23  ;;  %v1143_v16 = vld [vmem:[#allocation9 + $0x28] sm:$0xff]  ;;  %v1145_v23 = vld [vmem:[#allocation9 + $0x38] sm:$0xff] }
 0xaaf   :  { %1480 = vtanh.f32 %v918_v28  ;;  %v1430_v56 = vpack.c.bf16 %v1143_v16, %v1142_v35  ;;  %v1433_v28 = vpack.c.bf16 %v1145_v23, %v1144_v21 }
 0xab7   :  { %v1479_v30 = vpop.eup %1478 }
 0xab8   :  { %v921_v40 = vmul.f32 0.5, %v1479_v30 }
 0xab9   :  { %v1481_v33 = vpop.eup %1480 }
 0xaba   :  { %v922_v44 = vmul.f32 0.5, %v1481_v33  ;;  %v923_v17 = vadd.f32 0.5, %v921_v40 }
 0xabc   :  { %v924_v54 = vadd.f32 0.5, %v922_v44  ;;  %v927_v57 = vmul.f32 %v923_v17, %v832_v15 }
 0xabe   :  { %v926_v22 = vsel %vm305_vm3, %v1481_v33, %v924_v54 }
 0xabf   :  { %v928_v50 = vmul.f32 %v926_v22, %v923_v17  ;;  %v1261_v17 = vld [vmem:[%s2082_s5] ss:$0 sm:$0xff] }
 0xac1   :  { %930 = vrot.lane.b32.xlu0 %v928_v50, %s1623_s2 }
 0xb33   :  { %v931_v19 = vpop.permute.xlu0 %930 }
 0xb34   :  { %v933_v26 = vadd.f32 %v931_v19, %v927_v57 }
 0xb36   :  { %1482 = vtanh.f32 %v933_v26 }
 0xb40   :  { %v1483_v9 = vpop.eup %1482 }
 0xb41   :  { %v935_v43 = vmul.f32 %v1483_v9, %v926_v22 }
 0xb43   :  { %939 = vrot.lane.b32.xlu1 %v935_v43, %s1623_s2 }
 0xbb5   :  { %v940_v46 = vpop.permute.xlu1 %939 }
 0xbb6   :  { %1259 = vmatmul.mubr.msk.f32.vlgmr.msra.gmra.mrb[20].mxu0 %vm315_vm4, %v940_v46 }
 0xbb7   :  { %1288 = vmatprep.mubr.msk.f32.mxu0 %vm1625_vm5, %v1622_v0  ;;  %1425 = vmatpush3.bf16.msra.mxu0 %v1424_v12 }
 0xbb8   :  { %1426 = vmatprep.subr.bf16.mxu0 %v1624_v18 }
 0xc89   :  { %v1009_v14 = vpop.f32.mrb[20].mxu0 }
 0xc8a   :  { %v1014_v47 = vadd.f32 %v1009_v14, %v936_v34  ;;  %v1011_v51 = vpop.f32.mrb[21].mxu0 }
 0xc8b   :  { %v1015_v53 = vadd.f32 %v1011_v51, %v937_v37 }
 0xc8c   :  { %v1016_v55 = vmul.f32 0.5, %v1014_v47 }
 0xc8d   :  { %v1017_v20 = vmul.f32 0.5, %v1015_v53 }
 0xc8e   :  { %1484 = vtanh.f32 %v1016_v55 }
 0xc8f   :  { %v1019_v58 = vsel %vm305_vm3, %v1015_v53, %v1017_v20 }
 0xc90   :  { %1486 = vtanh.f32 %v1019_v58 }
 0xc98   :  { %v1485_v59 = vpop.eup %1484 }
 0xc99   :  { %v1022_v61 = vmul.f32 0.5, %v1485_v59 }
 0xc9a   :  { %v1487_v25 = vpop.eup %1486 }
 0xc9b   :  { %v1023_v62 = vmul.f32 0.5, %v1487_v25  ;;  %v1024_v27 = vadd.f32 0.5, %v1022_v61 }
 0xc9d   :  { %v1025_v49 = vadd.f32 0.5, %v1023_v62  ;;  %v1028_v52 = vmul.f32 %v1024_v27, %v933_v26 }
 0xc9f   :  { %v1027_v34 = vsel %vm305_vm3, %v1487_v25, %v1025_v49 }
 0xca0   :  { %v1029_v1 = vmul.f32 %v1027_v34, %v1024_v27 }
 0xca2   :  { %1031 = vrot.lane.b32.xlu0 %v1029_v1, %s1623_s2 }
 0xd14   :  { %v1032_v31 = vpop.permute.xlu0 %1031 }
 0xd15   :  { %v1034_v37 = vadd.f32 %v1032_v31, %v1028_v52 }
 0xd17   :  { %1488 = vtanh.f32 %v1034_v37 }
 0xd21   :  { %v1489_v2 = vpop.eup %1488 }
 0xd22   :  { %v1036_v32 = vmul.f32 %v1489_v2, %v1027_v34 }
 0xd24   :  { %1040 = vrot.lane.b32.xlu1 %v1036_v32, %s1623_s2 }
 0xd96   :  { %v1041_v36 = vpop.permute.xlu1 %1040 }
 0xd97   :  { %1260 = vmatmul.mubr.msk.f32.vlgmr.msra.gmra.mrb[8].mxu1 %vm315_vm4, %v1041_v36 }
 0xe6a   :  { %v1110_v6 = vpop.f32.mrb[8].mxu1 }
 0xe6b   :  { %v1115_v4 = vadd.f32 %v1110_v6, %v1037_v48  ;;  %v1112_v60 = vpop.f32.mrb[9].mxu1 }
 0xe6c   :  { %v1116_v5 = vadd.f32 %v1112_v60, %v1038_v45  ;;  %v1140_v45 = vld [vmem:[#allocation9 + $0x10] sm:$0xff] }
 0xe6d   :  { %v1117_v10 = vmul.f32 0.5, %v1115_v4  ;;  %v1427_v13 = vpack.c.bf16 %v1141_v29, %v1140_v45 }
 0xe6e   :  { %v1118_v11 = vmul.f32 0.5, %v1116_v5 }
 0xe6f   :  { %1490 = vtanh.f32 %v1117_v10  ;;  %1428 = vmatpush3.bf16.msra.mxu0 %v1427_v13 }
 0xe70   :  { %v1120_v63 = vsel %vm305_vm3, %v1116_v5, %v1118_v11  ;;  %1429 = vmatprep.subr.bf16.mxu0 %v1624_v18 }
 0xe71   :  { %1492 = vtanh.f32 %v1120_v63 }
 0xe73   :  { %1431 = vmatpush3.bf16.msra.mxu0 %v1430_v56 }
 0xe74   :  { %1432 = vmatprep.subr.bf16.mxu0 %v1624_v18 }
 0xe77   :  { %1434 = vmatpush3.bf16.msra.mxu0 %v1433_v28 }
 0xe79   :  { %v1491_v8 = vpop.eup %1490 }
 0xe7a   :  { %v1123_v15 = vmul.f32 0.5, %v1491_v8 }
 0xe7b   :  { %v1493_v3 = vpop.eup %1492 }
 0xe7c   :  { %v1124_v24 = vmul.f32 0.5, %v1493_v3  ;;  %v1125_v39 = vadd.f32 0.5, %v1123_v15 }
 0xe7e   :  { %v1126_v38 = vadd.f32 0.5, %v1124_v24  ;;  %v1129_v30 = vmul.f32 %v1125_v39, %v1034_v37 }
 0xe80   :  { %v1128_v7 = vsel %vm305_vm3, %v1493_v3, %v1126_v38 }
 0xe81   :  { %v1130_v48 = vmul.f32 %v1128_v7, %v1125_v39 }
 0xe83   :  { %1132 = vrot.lane.b32.xlu0 %v1130_v48, %s1623_s2 }
 0xef5   :  { %v1133_v33 = vpop.permute.xlu0 %1132 }
 0xef6   :  { %v1135_v40 = vadd.f32 %v1133_v33, %v1129_v30 }
 0xef8   :  { %1494 = vtanh.f32 %v1135_v40 }
 0xf02   :  { %v1495_v44 = vpop.eup %1494 }
 0xf03   :  { %v1137_v0 = vmul.f32 %v1495_v44, %v1128_v7 }
 0xf05   :  { %1154 = vrot.lane.b32.xlu1 %v1137_v0, %s1623_s2 }
 0xf77   :  { %v1155_v54 = vpop.permute.xlu1 %1154 }
 0xf78   :  { %1289 = vmatmul.mubr.msk.f32.vlgmr.msra.gmra.mrb[22].mxu0 %vm315_vm4, %v1155_v54 }
0x104b   :  { %v1224_v22 = vpop.f32.mrb[22].mxu0 }
0x104c   :  { %v1225_v50 = vadd.f32 %v1261_v17, %v1224_v22  ;;  %v1290_v57 = vpop.f32.mrb[23].mxu0 }
0x104e   :  { %1228 = vst [vmem:[#allocation11] sm:$0xff] %v1225_v50 }
0x104f   :  { %1595 = shalt.err (!%p1592_p8)
}
0x1050   :  { %s1596_s29 = scalar_lea.hbm %s2083_s6, 128 }
0x1051   :  { %p1597_p9 = scmp.ne.s32.totalorder %s2083_s6, %s1596_s29  ;;  %p1600_p10 = scmp.lt.u32.totalorder %s1596_s29, %s2083_s6 }
0x1053   :  { %p1602_p11 = pnand %p1600_p10, %p1597_p9 }
0x1055   :  { %1605 = shalt.err (!%p1602_p11)
}
0x1056   :  { %1238 = dma.vmem_to_hbm [thread:$0]  %s1236_s25, 128, %s2083_s6, [#allocation5]  }
0x1057   :  { %1612 = dma.done.wait [#allocation5], 128  }
0x1058   :  { %1613 = vsyncadd [#allocation5], 4294967168 }
0x1059   :  { %1242 = vsyncpa [#allocation4], 1 }
0x105a   :  { %1243 = vsyncpa [#allocation7], 1 }
0x105b   :  { %1244 = vsyncpa [#allocation10], 1 }
0x105c   :  { %1245 = vsyncpa [#allocation5], 1 }

</bundles_post_ra>
